<compile_context>
chip_gen: v5e
topology: v5e:2x2
jax: 0.10.0
libtpu: 0.0.40
codegen_flags: <defaults>
</compile_context>

<pallas_src>
import math

import jax
import jax.numpy as jnp
from jax import lax
from jax.experimental import pallas as pl
from jax.experimental.pallas import tpu as pltpu


def _mha_edge_kernel(q_ref, k_ref, v_ref, expand_ref, inv_cnt_ref,
                     sel_r_ref, sel_c_ref, sel_ct_ref,
                     out_ref,
                     m_s, l_s, acc_s):
    t = pl.program_id(0)

    # ---- init (first edge tile): online scatter-softmax state.
    # m=0, l=1 implements clamp(max, 0) and the "+ exp(-src_max)" term.
    @pl.when(t == 0)
    def _init():
        m_s[...] = jnp.zeros_like(m_s)
        l_s[...] = jnp.ones_like(l_s)
        acc_s[...] = jnp.zeros_like(acc_s)

    sel_r = sel_r_ref[...]        # (TE, Np) bf16 one-hot source rows
    sel_c = sel_c_ref[...]        # (TE, Np) bf16 one-hot destination rows
    sel_ct = sel_ct_ref[...]      # (Np, TE) bf16 pre-transposed destination
    expand = expand_ref[...]      # (H, D) f32 head block matrix

    # Batched gathers for ALL heads (bf16 MXU, f32 accumulation).
    q_e = jnp.dot(sel_c, q_ref[...], preferred_element_type=jnp.float32)  # (TE, D)
    k_e = jnp.dot(sel_r, k_ref[...], preferred_element_type=jnp.float32)  # (TE, D)
    v_e = jnp.dot(sel_r, v_ref[...], preferred_element_type=jnp.float32)  # (TE, D)

    # Head-major per-edge scores: pool q*k over each head's hdim lanes via the
    # (H, D) block matrix (1/sqrt(hdim) already folded into Q).
    scores = lax.dot_general(expand, q_e * k_e, (((1,), (1,)), ((), ())),
                             preferred_element_type=jnp.float32)          # (H, TE)

    # Tile-local scatter-max per head: single fused masked max, lane axis = N.
    mask = sel_c > 0                                                       # (TE, Np)
    mt = jnp.max(jnp.where(mask[None, :, :], scores[:, :, None], -jnp.inf),
                 axis=1)                                                   # (H, Np)

    m_old = m_s[...]                                                       # (H, Np)
    m_new = jnp.maximum(m_old, mt)                                         # (H, Np)
    alpha = jnp.exp(m_old - m_new)                                         # (H, Np)

    # Gather the new per-node max back to edges in f32 (exact exp argument).
    m_e = lax.dot_general(m_new, sel_c.astype(jnp.float32),
                          (((1,), (1,)), ((), ())),
                          preferred_element_type=jnp.float32)              # (H, TE)
    p = jnp.exp(scores - m_e)                                              # (H, TE)

    # Denominator scatter-add: bf16 MXU matmul, f32 accumulation, no transpose.
    l_s[...] = alpha * l_s[...] + jnp.dot(
        p.astype(jnp.bfloat16), sel_c, preferred_element_type=jnp.float32)

    # Weighted values: one D-wide scatter for all heads (bf16 MXU) using the
    # pre-transposed selector streamed from HBM.
    p_rep = lax.dot_general(p, expand, (((0,), (0,)), ((), ())),
                            preferred_element_type=jnp.float32)            # (TE, D)
    weighted = (p_rep * v_e).astype(jnp.bfloat16)                          # (TE, D)
    alpha_rep = lax.dot_general(alpha, expand, (((0,), (0,)), ((), ())),
                                preferred_element_type=jnp.float32)        # (Np, D)
    acc_s[...] = alpha_rep * acc_s[...] + jnp.dot(
        sel_ct, weighted, preferred_element_type=jnp.float32)              # (Np, D)
    m_s[...] = m_new

    # ---- finalize (last edge tile): normalize + scatter_mean.  Output
    # projection is hoisted to the wrapper.
    @pl.when(t == pl.num_programs(0) - 1)
    def _finalize():
        inv_l = pl.reciprocal(l_s[...], approx=False)                      # (H, Np)
        inv_l_rep = lax.dot_general(inv_l, expand, (((0,), (0,)), ((), ())),
                                    preferred_element_type=jnp.float32)    # (Np, D)
        out_ref[...] = acc_s[...] * inv_l_rep * inv_cnt_ref[...]


def _vmem_limit_bytes():
    cap = 128 * 1024 * 1024
    try:
        info = pltpu.get_tpu_info()
        for attr in ("vmem_capacity_bytes", "vmem_size_bytes", "vmem_bytes"):
            v = getattr(info, attr, None)
            if v:
                cap = int(v)
                break
    except Exception:
        pass
    # ~75% of physical VMEM, capped at 100 MiB (v5e/v6e) -> ~48 MiB on v7x.
    return int(min(cap * 3 // 4, 100 * 1024 * 1024))


def multi_head_dot_product(feats, edge_index, params, nhead, *, edge_tile=512):
    """Graph multi-head attention forward (aggr='mean', dropout=0)."""
    N, D = feats.shape
    hdim = D // nhead
    E = edge_index.shape[0]
    r = edge_index[:, 0]
    c = edge_index[:, 1]
    wq, bq, wk, bk, wv, bv, wo, bo = params

    f32 = jnp.float32
    scale = 1.0 / math.sqrt(hdim)

    # ---- hoisted one-shot QKV projections (plain XLA), scale folded into Q.
    x = feats.astype(f32)
    q = (x @ wq.T.astype(f32) + bq.astype(f32)) * scale
    k = x @ wk.T.astype(f32) + bk.astype(f32)
    v = x @ wv.T.astype(f32) + bv.astype(f32)

    # Lane-dense node padding (N is the selector lane axis).
    n_pad = int(pl.cdiv(N, 128)) * 128
    pad_n = n_pad - N
    q_n = jnp.pad(q, ((0, pad_n), (0, 0))).astype(jnp.bfloat16)
    k_n = jnp.pad(k, ((0, pad_n), (0, 0))).astype(jnp.bfloat16)
    v_n = jnp.pad(v, ((0, pad_n), (0, 0))).astype(jnp.bfloat16)

    # Large, 128-aligned edge tile, clipped to the padded edge count.
    edge_tile = max(128, (int(edge_tile) // 128) * 128)
    min_epad = int(pl.cdiv(max(E, 1), 128)) * 128
    edge_tile = min(edge_tile, min_epad)
    e_pad = int(pl.cdiv(E, edge_tile)) * edge_tile

    # bf16 one-hot selectors (0/1 exact in bf16); zero rows for edge padding.
    sel_r = jnp.pad(jax.nn.one_hot(r, n_pad, dtype=jnp.bfloat16),
                    ((0, e_pad - E), (0, 0)))                    # (Ep, Np)
    sel_c = jnp.pad(jax.nn.one_hot(c, n_pad, dtype=jnp.bfloat16),
                    ((0, e_pad - E), (0, 0)))                    # (Ep, Np)
    sel_ct = sel_c.T                                             # (Np, Ep)

    # scatter_mean normalizer per destination node.
    cnt = jnp.zeros((n_pad,), f32).at[c].add(1.0)
    inv_cnt = (1.0 / jnp.maximum(cnt, 1.0)).reshape(n_pad, 1)

    # (H, D) head block matrix: row h is 1 on head h's hdim lanes.
    expand = jnp.repeat(jnp.eye(nhead, dtype=f32), hdim, axis=1)

    const = lambda e: (0, 0)
    in_specs = [
        pl.BlockSpec((n_pad, D), const),                      # q (projected)
        pl.BlockSpec((n_pad, D), const),                      # k
        pl.BlockSpec((n_pad, D), const),                      # v
        pl.BlockSpec((nhead, D), const),                      # head expand matrix
        pl.BlockSpec((n_pad, 1), const),                      # inv_cnt
        pl.BlockSpec((edge_tile, n_pad), lambda e: (e, 0)),   # sel_r edge tile
        pl.BlockSpec((edge_tile, n_pad), lambda e: (e, 0)),   # sel_c edge tile
        pl.BlockSpec((n_pad, edge_tile), lambda e: (0, e)),   # sel_c^T edge tile
    ]
    scratch = [
        pltpu.VMEM((nhead, n_pad), f32),   # running scatter-max m (head-major)
        pltpu.VMEM((nhead, n_pad), f32),   # running denominator l (head-major)
        pltpu.VMEM((n_pad, D), f32),       # weighted-value accumulator
    ]

    node_out = pl.pallas_call(
        _mha_edge_kernel,
        out_shape=jax.ShapeDtypeStruct((n_pad, D), f32),
        grid_spec=pltpu.PrefetchScalarGridSpec(
            num_scalar_prefetch=0,
            grid=(e_pad // edge_tile,),
            in_specs=in_specs,
            out_specs=pl.BlockSpec((n_pad, D), const),
            scratch_shapes=scratch),
        compiler_params=pltpu.CompilerParams(
            dimension_semantics=("arbitrary",),        # edge axis is a reduction
            vmem_limit_bytes=_vmem_limit_bytes()),
    )(q_n, k_n, v_n, expand, inv_cnt, sel_r, sel_c, sel_ct)

    # ---- hoisted one-shot output projection (plain XLA).
    return node_out[:N] @ wo.T.astype(f32) + bo.astype(f32)


def reference(feats, edge_index, params, nhead):
    """Pure-JAX f32 reference reproducing the PyTorch forward (aggr='mean', p=0)."""
    N, D = feats.shape
    hdim = D // nhead
    r = edge_index[:, 0]
    c = edge_index[:, 1]
    wq, bq, wk, bk, wv, bv, wo, bo = params

    q = (feats @ wq.T + bq).reshape(N, nhead, hdim).transpose(1, 0, 2)
    k = (feats @ wk.T + bk).reshape(N, nhead, hdim).transpose(1, 0, 2)
    v = (feats @ wv.T + bv).reshape(N, nhead, hdim).transpose(1, 0, 2)

    scores = jnp.sum(q[:, c] * k[:, r], axis=-1) / math.sqrt(hdim)   # (H, E)
    src_max = jnp.full((nhead, N), -jnp.inf).at[:, c].max(scores)
    src_max = jnp.maximum(src_max, 0.0)
    src = jnp.exp(scores - src_max[:, c])
    denom = jnp.zeros((nhead, N)).at[:, c].add(src)
    attn_w = src / (denom + jnp.exp(-src_max))[:, c]                 # (H, E)
    weighted = attn_w[..., None] * v[:, r]                           # (H, E, hd)
    summed = jnp.zeros((nhead, N, hdim)).at[:, c].add(weighted)
    cnt = jnp.maximum(jnp.zeros((N,)).at[c].add(1.0), 1.0)
    out = summed / cnt[None, :, None]
    out = out.transpose(1, 0, 2).reshape(N, D)
    return out @ wo.T + bo


def xavier_uniform(key, shape):
    fan_out, fan_in = shape
    bound = math.sqrt(6.0 / (fan_in + fan_out))
    return jax.random.uniform(key, shape, jnp.float32, -bound, bound)


if __name__ == "__main__":
    N, D, H, E = 16, 32, 4, 64       # nodes, embed_dim, nhead, edges
    key = jax.random.PRNGKey(0)
    keys = jax.random.split(key, 8)

    feats = jax.random.normal(keys[0], (N, D), jnp.float32)
    r = jax.random.randint(keys[1], (E,), 0, N, dtype=jnp.int32)
    c = jax.random.randint(keys[2], (E,), 0, N, dtype=jnp.int32)
    edge_index = jnp.stack([r, c], axis=1)                 # (E, 2)

    wq = xavier_uniform(keys[3], (D, D)); bq = jnp.zeros((D,), jnp.float32)
    wk = xavier_uniform(keys[4], (D, D)); bk = jnp.zeros((D,), jnp.float32)
    wv = xavier_uniform(keys[5], (D, D)); bv = jnp.zeros((D,), jnp.float32)
    wo = xavier_uniform(keys[6], (D, D)); bo = jnp.zeros((D,), jnp.float32)
    params = (wq, bq, wk, bk, wv, bv, wo, bo)

    out = jax.block_until_ready(
        multi_head_dot_product(feats, edge_index, params, H))
    ref = reference(feats, edge_index, params, H)

    assert out.shape == (N, D)
    # bf16 MXU operands on the gather/scatter matmuls (per the perf review)
    # give ~1e-2-level agreement against the pure-f32 reference.
    assert jnp.allclose(out, ref, atol=5e-2, rtol=5e-2), (
        f"max abs diff = {jnp.max(jnp.abs(out - ref))}")
    print("KERNEL_OK")
</pallas_src>

<mosaic_0001>
module attributes {stable_mosaic.version = 11 : i64} {
  func.func @_mha_edge_kernel(%arg0: i32, %arg1: memref<128x32xbf16, #tpu.memory_space<vmem>>, %arg2: memref<128x32xbf16, #tpu.memory_space<vmem>>, %arg3: memref<128x32xbf16, #tpu.memory_space<vmem>>, %arg4: memref<4x32xf32, #tpu.memory_space<vmem>>, %arg5: memref<128x1xf32, #tpu.memory_space<vmem>>, %arg6: memref<128x128xbf16, #tpu.memory_space<vmem>>, %arg7: memref<128x128xbf16, #tpu.memory_space<vmem>>, %arg8: memref<128x128xbf16, #tpu.memory_space<vmem>>, %arg9: memref<128x32xf32, #tpu.memory_space<vmem>>, %arg10: memref<4x128xf32, #tpu.memory_space<vmem>>, %arg11: memref<4x128xf32, #tpu.memory_space<vmem>>, %arg12: memref<128x32xf32, #tpu.memory_space<vmem>>) attributes {dimension_semantics = [#tpu.dimension_semantics<arbitrary>], iteration_bounds = array<i64: 1>, scalar_prefetch = 0 : i64, scratch_operands = 3 : i64, tpu.core_type = #tpu.core_type<tc>, window_params = [{pipeline_mode = #tpu.pipeline_mode<synchronous>, transform_indices = @transform_0, window_bounds = array<i64: 128, 32>}, {pipeline_mode = #tpu.pipeline_mode<synchronous>, transform_indices = @transform_1, window_bounds = array<i64: 128, 32>}, {pipeline_mode = #tpu.pipeline_mode<synchronous>, transform_indices = @transform_2, window_bounds = array<i64: 128, 32>}, {pipeline_mode = #tpu.pipeline_mode<synchronous>, transform_indices = @transform_3, window_bounds = array<i64: 4, 32>}, {pipeline_mode = #tpu.pipeline_mode<synchronous>, transform_indices = @transform_4, window_bounds = array<i64: 128, 1>}, {transform_indices = @transform_5, window_bounds = array<i64: 128, 128>}, {transform_indices = @transform_6, window_bounds = array<i64: 128, 128>}, {transform_indices = @transform_7, window_bounds = array<i64: 128, 128>}, {pipeline_mode = #tpu.pipeline_mode<synchronous>, transform_indices = @transform_8, window_bounds = array<i64: 128, 32>}]} {
    %c0_i32 = arith.constant 0 : i32
    %0 = arith.cmpi eq, %arg0, %c0_i32 : i32
    %1 = arith.extui %0 : i1 to i32
    %c0_i32_0 = arith.constant 0 : i32
    %2 = arith.cmpi ne, %1, %c0_i32_0 : i32
    scf.if %2 {
      %cst_39 = arith.constant 0.000000e+00 : f32
      %53 = vector.broadcast %cst_39 : f32 to vector<4x128xf32>
      %c0_40 = arith.constant 0 : index
      %c0_41 = arith.constant 0 : index
      %54 = vector.load %arg10[%c0_40, %c0_41] : memref<4x128xf32, #tpu.memory_space<vmem>>, vector<4x128xf32>
      tpu.vector_store %arg10[%c0_40, %c0_41], %53 {strides = array<i32>} : memref<4x128xf32, #tpu.memory_space<vmem>>, vector<4x128xf32>,
      %cst_42 = arith.constant 1.000000e+00 : f32
      %55 = vector.broadcast %cst_42 : f32 to vector<4x128xf32>
      %c0_43 = arith.constant 0 : index
      %c0_44 = arith.constant 0 : index
      %56 = vector.load %arg11[%c0_43, %c0_44] : memref<4x128xf32, #tpu.memory_space<vmem>>, vector<4x128xf32>
      tpu.vector_store %arg11[%c0_43, %c0_44], %55 {strides = array<i32>} : memref<4x128xf32, #tpu.memory_space<vmem>>, vector<4x128xf32>,
      %cst_45 = arith.constant 0.000000e+00 : f32
      %57 = vector.broadcast %cst_45 : f32 to vector<128x32xf32>
      %c0_46 = arith.constant 0 : index
      %c0_47 = arith.constant 0 : index
      %58 = vector.load %arg12[%c0_46, %c0_47] : memref<128x32xf32, #tpu.memory_space<vmem>>, vector<128x32xf32>
      tpu.vector_store %arg12[%c0_46, %c0_47], %57 {strides = array<i32>} : memref<128x32xf32, #tpu.memory_space<vmem>>, vector<128x32xf32>,
    } else {
    }
    %c0 = arith.constant 0 : index
    %c0_1 = arith.constant 0 : index
    %3 = vector.load %arg6[%c0, %c0_1] : memref<128x128xbf16, #tpu.memory_space<vmem>>, vector<128x128xbf16>
    %c0_2 = arith.constant 0 : index
    %c0_3 = arith.constant 0 : index
    %4 = vector.load %arg7[%c0_2, %c0_3] : memref<128x128xbf16, #tpu.memory_space<vmem>>, vector<128x128xbf16>
    %c0_4 = arith.constant 0 : index
    %c0_5 = arith.constant 0 : index
    %5 = vector.load %arg8[%c0_4, %c0_5] : memref<128x128xbf16, #tpu.memory_space<vmem>>, vector<128x128xbf16>
    %c0_6 = arith.constant 0 : index
    %c0_7 = arith.constant 0 : index
    %6 = vector.load %arg4[%c0_6, %c0_7] : memref<4x32xf32, #tpu.memory_space<vmem>>, vector<4x32xf32>
    %c0_8 = arith.constant 0 : index
    %c0_9 = arith.constant 0 : index
    %7 = vector.load %arg1[%c0_8, %c0_9] : memref<128x32xbf16, #tpu.memory_space<vmem>>, vector<128x32xbf16>
    %cst = arith.constant dense<0.000000e+00> : vector<128x32xf32>
    %8 = tpu.matmul %4, %7, %cst {dimension_numbers = #tpu.dot_dimension_numbers<[1], [0], [0], [1], [0, 0, 1, 1], [], []>} : vector<128x128xbf16>, vector<128x32xbf16>, vector<128x32xf32> -> vector<128x32xf32>
    %c0_10 = arith.constant 0 : index
    %c0_11 = arith.constant 0 : index
    %9 = vector.load %arg2[%c0_10, %c0_11] : memref<128x32xbf16, #tpu.memory_space<vmem>>, vector<128x32xbf16>
    %cst_12 = arith.constant dense<0.000000e+00> : vector<128x32xf32>
    %10 = tpu.matmul %3, %9, %cst_12 {dimension_numbers = #tpu.dot_dimension_numbers<[1], [0], [0], [1], [0, 0, 1, 1], [], []>} : vector<128x128xbf16>, vector<128x32xbf16>, vector<128x32xf32> -> vector<128x32xf32>
    %c0_13 = arith.constant 0 : index
    %c0_14 = arith.constant 0 : index
    %11 = vector.load %arg3[%c0_13, %c0_14] : memref<128x32xbf16, #tpu.memory_space<vmem>>, vector<128x32xbf16>
    %cst_15 = arith.constant dense<0.000000e+00> : vector<128x32xf32>
    %12 = tpu.matmul %3, %11, %cst_15 {dimension_numbers = #tpu.dot_dimension_numbers<[1], [0], [0], [1], [0, 0, 1, 1], [], []>} : vector<128x128xbf16>, vector<128x32xbf16>, vector<128x32xf32> -> vector<128x32xf32>
    %13 = arith.mulf %8, %10 : vector<128x32xf32>
    %cst_16 = arith.constant dense<0.000000e+00> : vector<4x128xf32>
    %14 = tpu.matmul %6, %13, %cst_16 {dimension_numbers = #tpu.dot_dimension_numbers<[1], [1], [0], [0], [0, 0, 1, 0], [], []>} : vector<4x32xf32>, vector<128x32xf32>, vector<4x128xf32> -> vector<4x128xf32>
    %cst_17 = arith.constant 0.000000e+00 : bf16
    %15 = vector.broadcast %cst_17 : bf16 to vector<128x128xbf16>
    %16 = arith.cmpf ogt, %4, %15 : vector<128x128xbf16>
    %17 = vector.shape_cast %16 : vector<128x128xi1> to vector<1x128x128xi1>
    %18 = vector.shape_cast %14 : vector<4x128xf32> to vector<4x128x1xf32>
    %cst_18 = arith.constant 0xFF800000 : f32
    %19 = vector.shape_cast %17 : vector<1x128x128xi1> to vector<1x128x128xi1>
    %20 = vector.broadcast %19 : vector<1x128x128xi1> to vector<4x128x128xi1>
    %21 = vector.shape_cast %18 : vector<4x128x1xf32> to vector<4x128x1xf32>
    %22 = vector.broadcast %21 : vector<4x128x1xf32> to vector<4x128x128xf32>
    %23 = vector.broadcast %cst_18 : f32 to vector<4x128x128xf32>
    %24 = arith.select %20, %22, %23 : vector<4x128x128xi1>, vector<4x128x128xf32>
    %cst_19 = arith.constant dense<0xFF800000> : vector<4x128xf32>
    %25 = vector.multi_reduction <maximumf>, %24, %cst_19 [1] : vector<4x128x128xf32> to vector<4x128xf32>
    %c0_20 = arith.constant 0 : index
    %c0_21 = arith.constant 0 : index
    %26 = vector.load %arg10[%c0_20, %c0_21] : memref<4x128xf32, #tpu.memory_space<vmem>>, vector<4x128xf32>
    %27 = arith.maximumf %26, %25 : vector<4x128xf32>
    %28 = arith.subf %26, %27 : vector<4x128xf32>
    %29 = math.exp %28 : vector<4x128xf32>
    %30 = arith.extf %4 : vector<128x128xbf16> to vector<128x128xf32>
    %cst_22 = arith.constant dense<0.000000e+00> : vector<4x128xf32>
    %31 = tpu.matmul %27, %30, %cst_22 {dimension_numbers = #tpu.dot_dimension_numbers<[1], [1], [0], [0], [0, 0, 1, 0], [], []>} : vector<4x128xf32>, vector<128x128xf32>, vector<4x128xf32> -> vector<4x128xf32>
    %32 = arith.subf %14, %31 : vector<4x128xf32>
    %33 = math.exp %32 : vector<4x128xf32>
    %c0_23 = arith.constant 0 : index
    %c0_24 = arith.constant 0 : index
    %34 = vector.load %arg11[%c0_23, %c0_24] : memref<4x128xf32, #tpu.memory_space<vmem>>, vector<4x128xf32>
    %35 = arith.mulf %29, %34 : vector<4x128xf32>
    %36 = arith.truncf %33 : vector<4x128xf32> to vector<4x128xbf16>
    %cst_25 = arith.constant dense<0.000000e+00> : vector<4x128xf32>
    %37 = tpu.matmul %36, %4, %cst_25 {dimension_numbers = #tpu.dot_dimension_numbers<[1], [0], [0], [1], [0, 0, 1, 1], [], []>} : vector<4x128xbf16>, vector<128x128xbf16>, vector<4x128xf32> -> vector<4x128xf32>
    %38 = arith.addf %35, %37 : vector<4x128xf32>
    %c0_26 = arith.constant 0 : index
    %c0_27 = arith.constant 0 : index
    %39 = vector.load %arg11[%c0_26, %c0_27] : memref<4x128xf32, #tpu.memory_space<vmem>>, vector<4x128xf32>
    tpu.vector_store %arg11[%c0_26, %c0_27], %38 {strides = array<i32>} : memref<4x128xf32, #tpu.memory_space<vmem>>, vector<4x128xf32>,
    %cst_28 = arith.constant dense<0.000000e+00> : vector<128x32xf32>
    %40 = tpu.matmul %33, %6, %cst_28 {dimension_numbers = #tpu.dot_dimension_numbers<[0], [0], [1], [1], [0, 1, 1, 1], [], []>} : vector<4x128xf32>, vector<4x32xf32>, vector<128x32xf32> -> vector<128x32xf32>
    %41 = arith.mulf %40, %12 : vector<128x32xf32>
    %42 = arith.truncf %41 : vector<128x32xf32> to vector<128x32xbf16>
    %cst_29 = arith.constant dense<0.000000e+00> : vector<128x32xf32>
    %43 = tpu.matmul %29, %6, %cst_29 {dimension_numbers = #tpu.dot_dimension_numbers<[0], [0], [1], [1], [0, 1, 1, 1], [], []>} : vector<4x128xf32>, vector<4x32xf32>, vector<128x32xf32> -> vector<128x32xf32>
    %c0_30 = arith.constant 0 : index
    %c0_31 = arith.constant 0 : index
    %44 = vector.load %arg12[%c0_30, %c0_31] : memref<128x32xf32, #tpu.memory_space<vmem>>, vector<128x32xf32>
    %45 = arith.mulf %43, %44 : vector<128x32xf32>
    %cst_32 = arith.constant dense<0.000000e+00> : vector<128x32xf32>
    %46 = tpu.matmul %5, %42, %cst_32 {dimension_numbers = #tpu.dot_dimension_numbers<[1], [0], [0], [1], [0, 0, 1, 1], [], []>} : vector<128x128xbf16>, vector<128x32xbf16>, vector<128x32xf32> -> vector<128x32xf32>
    %47 = arith.addf %45, %46 : vector<128x32xf32>
    %c0_33 = arith.constant 0 : index
    %c0_34 = arith.constant 0 : index
    %48 = vector.load %arg12[%c0_33, %c0_34] : memref<128x32xf32, #tpu.memory_space<vmem>>, vector<128x32xf32>
    tpu.vector_store %arg12[%c0_33, %c0_34], %47 {strides = array<i32>} : memref<128x32xf32, #tpu.memory_space<vmem>>, vector<128x32xf32>,
    %c0_35 = arith.constant 0 : index
    %c0_36 = arith.constant 0 : index
    %49 = vector.load %arg10[%c0_35, %c0_36] : memref<4x128xf32, #tpu.memory_space<vmem>>, vector<4x128xf32>
    tpu.vector_store %arg10[%c0_35, %c0_36], %27 {strides = array<i32>} : memref<4x128xf32, #tpu.memory_space<vmem>>, vector<4x128xf32>,
    %c0_i32_37 = arith.constant 0 : i32
    %50 = arith.cmpi eq, %arg0, %c0_i32_37 : i32
    %51 = arith.extui %50 : i1 to i32
    %c0_i32_38 = arith.constant 0 : i32
    %52 = arith.cmpi ne, %51, %c0_i32_38 : i32
    scf.if %52 {
      %c0_39 = arith.constant 0 : index
      %c0_40 = arith.constant 0 : index
      %53 = vector.load %arg11[%c0_39, %c0_40] : memref<4x128xf32, #tpu.memory_space<vmem>>, vector<4x128xf32>
      %54 = tpu.reciprocal %53 : vector<4x128xf32> -> vector<4x128xf32>
      %cst_41 = arith.constant dense<0.000000e+00> : vector<128x32xf32>
      %55 = tpu.matmul %54, %6, %cst_41 {dimension_numbers = #tpu.dot_dimension_numbers<[0], [0], [1], [1], [0, 1, 1, 1], [], []>} : vector<4x128xf32>, vector<4x32xf32>, vector<128x32xf32> -> vector<128x32xf32>
      %c0_42 = arith.constant 0 : index
      %c0_43 = arith.constant 0 : index
      %56 = vector.load %arg12[%c0_42, %c0_43] : memref<128x32xf32, #tpu.memory_space<vmem>>, vector<128x32xf32>
      %57 = arith.mulf %56, %55 : vector<128x32xf32>
      %c0_44 = arith.constant 0 : index
      %c0_45 = arith.constant 0 : index
      %58 = vector.load %arg5[%c0_44, %c0_45] : memref<128x1xf32, #tpu.memory_space<vmem>>, vector<128x1xf32>
      %59 = vector.broadcast %58 : vector<128x1xf32> to vector<128x32xf32>
      %60 = arith.mulf %57, %59 : vector<128x32xf32>
      %c0_46 = arith.constant 0 : index
      %c0_47 = arith.constant 0 : index
      %61 = vector.load %arg9[%c0_46, %c0_47] : memref<128x32xf32, #tpu.memory_space<vmem>>, vector<128x32xf32>
      tpu.vector_store %arg9[%c0_46, %c0_47], %60 {strides = array<i32>} : memref<128x32xf32, #tpu.memory_space<vmem>>, vector<128x32xf32>,
    } else {
    }
    return
  }
  func.func @transform_0(%arg0: i32) -> (i32, i32) {
    %c0_i32 = arith.constant 0 : i32
    %c0_i32_0 = arith.constant 0 : i32
    %c0_i32_1 = arith.constant 0 : i32
    return %c0_i32, %c0_i32_0 : i32, i32
  }
  func.func @transform_1(%arg0: i32) -> (i32, i32) {
    %c0_i32 = arith.constant 0 : i32
    %c0_i32_0 = arith.constant 0 : i32
    %c0_i32_1 = arith.constant 0 : i32
    return %c0_i32, %c0_i32_0 : i32, i32
  }
  func.func @transform_2(%arg0: i32) -> (i32, i32) {
    %c0_i32 = arith.constant 0 : i32
    %c0_i32_0 = arith.constant 0 : i32
    %c0_i32_1 = arith.constant 0 : i32
    return %c0_i32, %c0_i32_0 : i32, i32
  }
  func.func @transform_3(%arg0: i32) -> (i32, i32) {
    %c0_i32 = arith.constant 0 : i32
    %c0_i32_0 = arith.constant 0 : i32
    %c0_i32_1 = arith.constant 0 : i32
    return %c0_i32, %c0_i32_0 : i32, i32
  }
  func.func @transform_4(%arg0: i32) -> (i32, i32) {
    %c0_i32 = arith.constant 0 : i32
    %c0_i32_0 = arith.constant 0 : i32
    %c0_i32_1 = arith.constant 0 : i32
    return %c0_i32, %c0_i32_0 : i32, i32
  }
  func.func @transform_5(%arg0: i32) -> (i32, i32) {
    %c0_i32 = arith.constant 0 : i32
    %c0_i32_0 = arith.constant 0 : i32
    return %arg0, %c0_i32 : i32, i32
  }
  func.func @transform_6(%arg0: i32) -> (i32, i32) {
    %c0_i32 = arith.constant 0 : i32
    %c0_i32_0 = arith.constant 0 : i32
    return %arg0, %c0_i32 : i32, i32
  }
  func.func @transform_7(%arg0: i32) -> (i32, i32) {
    %c0_i32 = arith.constant 0 : i32
    %c0_i32_0 = arith.constant 0 : i32
    return %c0_i32, %arg0 : i32, i32
  }
  func.func @transform_8(%arg0: i32) -> (i32, i32) {
    %c0_i32 = arith.constant 0 : i32
    %c0_i32_0 = arith.constant 0 : i32
    %c0_i32_1 = arith.constant 0 : i32
    return %c0_i32, %c0_i32_0 : i32, i32
  }
}

</mosaic_0001>

<bundles_post_ra>
// kernel: tpu_custom_call.1
= control target key start
LH: loop header
LB: loop body
LE: loop exit
PB: predicated region body
PF: predicated region fallthrough
CT: control target
= control target key end

     0   :  { %vm35_vm0 = vcmask 261120   ;;  %s3368_s0 = inlined_call_operand.vmem [shape: bf16[128,32], index: 0, kind: input, shape index: {}]   ;;  %s3369_s1 = inlined_call_operand.vmem [shape: bf16[128,32], index: 1, kind: input, shape index: {}]   ;;  %s3370_s6 = inlined_call_operand.vmem [shape: bf16[128,128], index: 6, kind: input, shape index: {}]   ;;  %s3371_s5 = inlined_call_operand.vmem [shape: bf16[128,128], index: 5, kind: input, shape index: {}]   ;;  %s3372_s3 = inlined_call_operand.vmem [shape: f32[4,32], index: 3, kind: input, shape index: {}]   ;;  %s3373_s4 = inlined_call_operand.vmem [shape: f32[128,1], index: 4, kind: input, shape index: {}]   ;;  %s3374_s2 = inlined_call_operand.vmem [shape: bf16[128,32], index: 2, kind: input, shape index: {}]   ;;  %s3375_s7 = inlined_call_operand.vmem [shape: bf16[128,128], index: 7, kind: input, shape index: {}]   ;;  %s3376_s8 = inlined_call_operand.vmem [shape: f32[128,32], index: 8, kind: output, shape index: {}]  }
   0x1   :  { %v2379_v0 = vld [vmem:[%s3368_s0 + $0x38] sm:$0xff]  ;;  %v2378_v2 = vld [vmem:[%s3368_s0 + $0x30] sm:$0xff]  ;;  %v2377_v4 = vld [vmem:[%s3368_s0 + $0x28] sm:$0xff] }
   0x2   :  { %v2387_v1 = vld [vmem:[%s3369_s1 + $0x38] sm:$0xff]  ;;  %213 = vmatpush.bf16.msra.mxu0 %v2379_v0  ;;  %v2386_v3 = vld [vmem:[%s3369_s1 + $0x30] sm:$0xff]  ;;  %v2385_v5 = vld [vmem:[%s3369_s1 + $0x28] sm:$0xff] }
   0x3   :  { %374 = vmatpush.bf16.msra.mxu1 %v2387_v1  ;;  %v2376_v6 = vld [vmem:[%s3368_s0 + $0x20] sm:$0xff]  ;;  %v2375_v8 = vld [vmem:[%s3368_s0 + $0x18] sm:$0xff]  ;;  %v2374_v10 = vld [vmem:[%s3368_s0 + $0x10] sm:$0xff] }
   0x4   :  { %v2384_v7 = vld [vmem:[%s3369_s1 + $0x20] sm:$0xff]  ;;  %v2383_v9 = vld [vmem:[%s3369_s1 + $0x18] sm:$0xff]  ;;  %v2382_v11 = vld [vmem:[%s3369_s1 + $0x10] sm:$0xff] }
   0x5   :  { %v2373_v12 = vld [vmem:[%s3368_s0 + $0x8] sm:$0xff]  ;;  %v2372_v14 = vld [vmem:[%s3368_s0] sm:$0xff]  ;;  %v2358_v20 = vld [vmem:[%s3370_s6 + $0x10] sm:$0xff] }
   0x6   :  { %214 = vmatpush.bf16.msra.mxu0 %v2378_v2  ;;  %v2381_v13 = vld [vmem:[%s3369_s1 + $0x8] sm:$0xff]  ;;  %v2380_v15 = vld [vmem:[%s3369_s1] sm:$0xff]  ;;  %v2350_v21 = vld [vmem:[%s3371_s5 + $0x10] sm:$0xff] }
   0x7   :  { %375 = vmatpush.bf16.msra.mxu1 %v2386_v3  ;;  %v2356_v16 = vld [vmem:[%s3370_s6] sm:$0xff]  ;;  %v2357_v18 = vld [vmem:[%s3370_s6 + $0x8] sm:$0xff]  ;;  %v2359_v22 = vld [vmem:[%s3370_s6 + $0x18] sm:$0xff] }
   0x8   :  { %v2348_v17 = vld [vmem:[%s3371_s5] sm:$0xff]  ;;  %v2349_v19 = vld [vmem:[%s3371_s5 + $0x8] sm:$0xff]  ;;  %v2351_v23 = vld [vmem:[%s3371_s5 + $0x18] sm:$0xff] }
   0x9   :  { %v2360_v24 = vld [vmem:[%s3370_s6 + $0x20] sm:$0xff]  ;;  %v2363_v26 = vld [vmem:[%s3370_s6 + $0x38] sm:$0xff]  ;;  %v2362_v27 = vld [vmem:[%s3370_s6 + $0x30] sm:$0xff] }
   0xa   :  { %215 = vmatpush.bf16.msra.mxu0 %v2377_v4  ;;  %v2352_v25 = vld [vmem:[%s3371_s5 + $0x20] sm:$0xff]  ;;  %v2361_v28 = vld [vmem:[%s3370_s6 + $0x28] sm:$0xff]  ;;  %v2354_v30 = vld [vmem:[%s3371_s5 + $0x30] sm:$0xff] }
   0xb   :  { %376 = vmatpush.bf16.msra.mxu1 %v2385_v5  ;;  %v2353_v29 = vld [vmem:[%s3371_s5 + $0x28] sm:$0xff]  ;;  %v2355_v31 = vld [vmem:[%s3371_s5 + $0x38] sm:$0xff] }
   0xe   :  { %216 = vmatpush.bf16.msra.mxu0 %v2376_v6 }
   0xf   :  { %377 = vmatpush.bf16.msra.mxu1 %v2384_v7 }
  0x12   :  { %217 = vmatpush.bf16.msra.mxu0 %v2375_v8 }
  0x13   :  { %378 = vmatpush.bf16.msra.mxu1 %v2383_v9  ;;  %v657_v9 = vlaneseq }
  0x16   :  { %218 = vmatpush.bf16.msra.mxu0 %v2374_v10  ;;  %v2619_v10 = vshrl.u32 %v657_v9, 7 }
  0x17   :  { %379 = vmatpush.bf16.msra.mxu1 %v2382_v11 }
  0x18   :  { %2404 = vset.pattern.permute.xlu2 %v2619_v10  ;;  %2402 = vset.pattern.permute.xlu1 %v2619_v10 }
  0x19   :  { %2400 = vset.pattern.permute.xlu0 %v2619_v10 }
  0x1a   :  { %219 = vmatpush.bf16.msra.mxu0 %v2373_v12 }
  0x1b   :  { %380 = vmatpush.bf16.msra.mxu1 %v2381_v13 }
  0x1e   :  { %220 = vmatpush.bf16.msra.mxu0 %v2372_v14 }
  0x1f   :  { %381 = vmatpush.bf16.msra.mxu1 %v2380_v15 }
  0x21   :  { %221 = vmatmul.bf16.vlgmr.msra.gmra.mxu0 %v2356_v16 }
  0x22   :  { %382 = vmatmul.bf16.vlgmr.msra.gmra.mxu1 %v2348_v17  ;;  %1266 = vmatpush.bf16.msrb.mxu0 %v2363_v26 }
  0x26   :  { %1267 = vmatpush.bf16.msrb.mxu0 %v2362_v27 }
  0x2a   :  { %1268 = vmatpush.bf16.msrb.mxu0 %v2361_v28 }
  0x2e   :  { %1269 = vmatpush.bf16.msrb.mxu0 %v2360_v24 }
  0x31   :  { %226 = vmatmul.bf16.gmra.mxu0 %v2357_v18 }
  0x32   :  { %387 = vmatmul.bf16.gmra.mxu1 %v2349_v19  ;;  %1270 = vmatpush.bf16.msrb.mxu0 %v2359_v22 }
  0x36   :  { %1271 = vmatpush.bf16.msrb.mxu0 %v2358_v20 }
  0x3a   :  { %1272 = vmatpush.bf16.msrb.mxu0 %v2357_v18  ;;  %v2638_v18 = vld [vmem:[%s3372_s3] sm:$0xf] }
  0x3e   :  { %1273 = vmatpush.bf16.msrb.mxu0 %v2356_v16 }
  0x41   :  { %231 = vmatmul.bf16.gmra.mxu0 %v2358_v20 }
  0x42   :  { %392 = vmatmul.bf16.gmra.mxu1 %v2350_v21 }
  0x51   :  { %236 = vmatmul.bf16.gmra.mxu0 %v2359_v22 }
  0x52   :  { %397 = vmatmul.bf16.gmra.mxu1 %v2351_v23  ;;  %v665_v23 = vadd.s32 8, %v2619_v10 }
  0x61   :  { %241 = vmatmul.bf16.gmra.mxu0 %v2360_v24  ;;  %v671_v24 = vadd.s32 16, %v2619_v10 }
  0x62   :  { %402 = vmatmul.bf16.gmra.mxu1 %v2352_v25 }
  0x71   :  { %246 = vmatmul.bf16.gmra.mxu0 %v2361_v28  ;;  %v695_v28 = vadd.s32 48, %v2619_v10 }
  0x72   :  { %407 = vmatmul.bf16.gmra.mxu1 %v2353_v29  ;;  %v701_v29 = vadd.s32 56, %v2619_v10 }
  0x81   :  { %251 = vmatmul.bf16.gmra.mxu0 %v2362_v27  ;;  %v683_v27 = vadd.s32 32, %v2619_v10 }
  0x82   :  { %412 = vmatmul.bf16.gmra.mxu1 %v2354_v30  ;;  %v689_v30 = vadd.s32 40, %v2619_v10 }
  0x91   :  { %256 = vmatmul.bf16.gmra.mxu0 %v2363_v26  ;;  %v677_v26 = vadd.s32 24, %v2619_v10 }
  0x92   :  { %417 = vmatmul.bf16.gmra.mxu1 %v2355_v31  ;;  %v2687_v31 = vld [vmem:[%s3370_s6] sm:$0xff]  }
  0x9e   :  { %v2602_v32 = vpop.f32.mrf.mxu0 }
  0x9f   :  { %v2604_v33 = vpop.f32.mrf.mxu1 }
  0xa0   :  { %v536_v17 = vmul.f32 %v2604_v33, %v2602_v32  ;;  %v624_v33 = vunpack.c.l.bf16 %v2687_v31 }
  0xa2   :  { %vm2694_vm1 = vcmp.gt.f32.partialorder %v624_v33, 0.0 }
  0xa6   :  { %v2606_v34 = vpop.f32.mrf.mxu0 }
  0xa7   :  { %v2608_v35 = vpop.f32.mrf.mxu1 }
  0xa8   :  { %v537_v16 = vmul.f32 %v2608_v35, %v2606_v34  ;;  %v625_v34 = vunpack.c.h.bf16 %v2687_v31 }
  0xaa   :  { %vm2702_vm2 = vcmp.gt.f32.partialorder %v625_v34, 0.0 }
  0xae   :  { %v227_v36 = vpop.f32.mrf.mxu0 }
  0xaf   :  { %v388_v37 = vpop.f32.mrf.mxu1 }
  0xb0   :  { %v538_v15 = vmul.f32 %v388_v37, %v227_v36 }
  0xb6   :  { %v229_v38 = vpop.f32.mrf.mxu0 }
  0xb7   :  { %v390_v39 = vpop.f32.mrf.mxu1 }
  0xb8   :  { %v539_v14 = vmul.f32 %v390_v39, %v229_v38 }
  0xbe   :  { %v232_v40 = vpop.f32.mrf.mxu0 }
  0xbf   :  { %v393_v41 = vpop.f32.mrf.mxu1 }
  0xc0   :  { %v540_v13 = vmul.f32 %v393_v41, %v232_v40  ;;  %v713_v41 = vadd.s32 72, %v2619_v10 }
  0xc6   :  { %v234_v42 = vpop.f32.mrf.mxu0 }
  0xc7   :  { %v395_v43 = vpop.f32.mrf.mxu1 }
  0xc8   :  { %v541_v12 = vmul.f32 %v395_v43, %v234_v42 }
  0xce   :  { %v237_v44 = vpop.f32.mrf.mxu0 }
  0xcf   :  { %v398_v45 = vpop.f32.mrf.mxu1 }
  0xd0   :  { %v542_v11 = vmul.f32 %v398_v45, %v237_v44  ;;  %v2719_v45 = vld [vmem:[%s3370_s6 + $0x8] sm:$0xff]  }
  0xd6   :  { %v239_v46 = vpop.f32.mrf.mxu0 }
  0xd7   :  { %v400_v47 = vpop.f32.mrf.mxu1 }
  0xd8   :  { %v543_v8 = vmul.f32 %v400_v47, %v239_v46  ;;  %v626_v46 = vunpack.c.l.bf16 %v2719_v45 }
  0xda   :  { %vm2725_vm3 = vcmp.gt.f32.partialorder %v626_v46, 0.0 }
  0xde   :  { %v242_v48 = vpop.f32.mrf.mxu0 }
  0xdf   :  { %v403_v49 = vpop.f32.mrf.mxu1 }
  0xe0   :  { %v544_v50 = vmul.f32 %v403_v49, %v242_v48 }
  0xe6   :  { %v244_v51 = vpop.f32.mrf.mxu0 }
  0xe7   :  { %v405_v52 = vpop.f32.mrf.mxu1 }
  0xe8   :  { %v545_v53 = vmul.f32 %v405_v52, %v244_v51 }
  0xee   :  { %v247_v54 = vpop.f32.mrf.mxu0 }
  0xef   :  { %v408_v55 = vpop.f32.mrf.mxu1 }
  0xf0   :  { %v546_v7 = vmul.f32 %v408_v55, %v247_v54 }
  0xf6   :  { %v249_v56 = vpop.f32.mrf.mxu0 }
  0xf7   :  { %v410_v57 = vpop.f32.mrf.mxu1 }
  0xf8   :  { %v547_v6 = vmul.f32 %v410_v57, %v249_v56 }
  0xfe   :  { %v252_v58 = vpop.f32.mrf.mxu0 }
  0xff   :  { %v413_v59 = vpop.f32.mrf.mxu1 }
 0x100   :  { %v548_v5 = vmul.f32 %v413_v59, %v252_v58 }
 0x106   :  { %v254_v60 = vpop.f32.mrf.mxu0 }
 0x107   :  { %v415_v61 = vpop.f32.mrf.mxu1 }
 0x108   :  { %v549_v4 = vmul.f32 %v415_v61, %v254_v60  ;;  %v2742_v60 = vadd.s32 88, %v2619_v10 }
 0x10e   :  { %v257_v62 = vpop.f32.mrf.mxu0 }
 0x10f   :  { %v418_v63 = vpop.f32.mrf.mxu1 }
 0x110   :  { %v550_v3 = vmul.f32 %v418_v63, %v257_v62  ;;  %v627_v62 = vunpack.c.h.bf16 %v2719_v45 }
 0x112   :  { %vm2752_vm4 = vcmp.gt.f32.partialorder %v627_v62, 0.0 }
 0x116   :  { %v259_v0 = vpop.f32.mrf.mxu0 }
 0x117   :  { %v420_v1 = vpop.f32.mrf.mxu1 }
 0x118   :  { %v551_v2 = vmul.f32 %v420_v1, %v259_v0 }
 0x11a   :  { %2248 = vmatpush.xpose.msk.msra.mxu3 %vm35_vm0, %v551_v2 }
 0x11e   :  { %2249 = vmatpush.xpose.msk.msra.mxu3 %vm35_vm0, %v550_v3 }
 0x122   :  { %2250 = vmatpush.xpose.msk.msra.mxu3 %vm35_vm0, %v549_v4 }
 0x126   :  { %2251 = vmatpush.xpose.msk.msra.mxu3 %vm35_vm0, %v548_v5 }
 0x12a   :  { %2252 = vmatpush.xpose.msk.msra.mxu3 %vm35_vm0, %v547_v6  ;;  %v707_v6 = vadd.s32 64, %v2619_v10 }
 0x12e   :  { %2253 = vmatpush.xpose.msk.msra.mxu3 %vm35_vm0, %v546_v7 }
 0x132   :  { %2254 = vmatpush.xpose.msk.msra.mxu3 %vm35_vm0, %v545_v53 }
 0x136   :  { %2255 = vmatpush.xpose.msk.msra.mxu3 %vm35_vm0, %v544_v50 }
 0x13a   :  { %2256 = vmatpush.xpose.msk.msra.mxu3 %vm35_vm0, %v543_v8  ;;  %v2765_v8 = vadd.s32 104, %v2619_v10 }
 0x13e   :  { %2257 = vmatpush.xpose.msk.msra.mxu3 %vm35_vm0, %v542_v11 }
 0x142   :  { %2258 = vmatpush.xpose.msk.msra.mxu3 %vm35_vm0, %v541_v12 }
 0x146   :  { %2259 = vmatpush.xpose.msk.msra.mxu3 %vm35_vm0, %v540_v13 }
 0x14a   :  { %2260 = vmatpush.xpose.msk.msra.mxu3 %vm35_vm0, %v539_v14 }
 0x14e   :  { %2261 = vmatpush.xpose.msk.msra.mxu3 %vm35_vm0, %v538_v15 }
 0x152   :  { %2262 = vmatpush.xpose.msk.msra.mxu3 %vm35_vm0, %v537_v16 }
 0x156   :  { %2263 = vmatpush.xpose.msk.msra.mxu3 %vm35_vm0, %v536_v17 }
 0x159   :  { %2264 = vmatmul.msk.f32.vlgmr.msra.gmra.mxu3 %vm35_vm0, %v2638_v18 }
 0x1dc   :  { %v2642_v19 = vpop.f32.mrf.mxu3 }
 0x1dd   :  { %v2645_v20 = vperm.slane %v2642_v19, 0  ;;  %v2648_v21 = vperm.slane %v2642_v19, 1  ;;  %v2651_v22 = vperm.slane %v2642_v19, 2  ;;  %v2663_v25 = vperm.slane %v2642_v19, 3 }
 0x1df   :  { %855 = vperm.xlu2 %2404, %v2651_v22   ;;  %758 = vperm.xlu1 %2402, %v2648_v21  }
 0x1e0   :  { %661 = vperm.xlu0 %2400, %v2645_v20  }
 0x1e7   :  { %2405 = vset.pattern.permute.xlu2 %v665_v23  ;;  %2403 = vset.pattern.permute.xlu1 %v665_v23 }
 0x1e8   :  { %2401 = vset.pattern.permute.xlu0 %v665_v23 }
 0x1ef   :  { %861 = vperm.xlu2 %2405, %v2651_v22   ;;  %764 = vperm.xlu1 %2403, %v2648_v21  }
 0x1f0   :  { %667 = vperm.xlu0 %2401, %v2645_v20  }
 0x1f7   :  { %2407 = vset.pattern.permute.xlu2 %v671_v24  ;;  %2406 = vset.pattern.permute.xlu1 %v671_v24 }
 0x1f8   :  { %2408 = vset.pattern.permute.xlu0 %v2619_v10 }
 0x1ff   :  { %770 = vperm.xlu2 %2407, %v2648_v21   ;;  %673 = vperm.xlu1 %2406, %v2645_v20  }
 0x200   :  { %952 = vperm.xlu0 %2408, %v2663_v25  }
 0x207   :  { %867 = vperm.xlu2 %2407, %v2651_v22   ;;  %2409 = vset.pattern.permute.xlu1 %v665_v23  ;;  %v2780_v23 = vld [vmem:[%s3370_s6 + $0x10] sm:$0xff]  }
 0x208   :  { %2412 = vset.pattern.permute.xlu0 %v671_v24  ;;  %v628_v24 = vunpack.c.l.bf16 %v2780_v23  ;;  %v629_v47 = vunpack.c.h.bf16 %v2780_v23 }
 0x20a   :  { %vm2788_vm5 = vcmp.gt.f32.partialorder %v628_v24, 0.0  ;;  %vm2815_vm6 = vcmp.gt.f32.partialorder %v629_v47, 0.0 }
 0x20f   :  { %2411 = vset.pattern.permute.xlu2 %v677_v26  ;;  %958 = vperm.xlu1 %2409, %v2663_v25  }
 0x210   :  { %964 = vperm.xlu0 %2412, %v2663_v25  }
 0x217   :  { %776 = vperm.xlu2 %2411, %v2648_v21   ;;  %2410 = vset.pattern.permute.xlu1 %v677_v26 }
 0x218   :  { %2416 = vset.pattern.permute.xlu0 %v683_v27 }
 0x21f   :  { %2413 = vset.pattern.permute.xlu2 %v683_v27  ;;  %679 = vperm.xlu1 %2410, %v2645_v20  }
 0x220   :  { %879 = vperm.xlu0 %2416, %v2651_v22  }
 0x227   :  { %685 = vperm.xlu2 %2413, %v2645_v20   ;;  %873 = vperm.xlu1 %2410, %v2651_v22  }
 0x228   :  { %2420 = vset.pattern.permute.xlu0 %v695_v28 }
 0x22f   :  { %2415 = vset.pattern.permute.xlu2 %v677_v26  ;;  %2414 = vset.pattern.permute.xlu1 %v683_v27 }
 0x230   :  { %697 = vperm.xlu0 %2420, %v2645_v20  }
 0x237   :  { %970 = vperm.xlu2 %2415, %v2663_v25   ;;  %782 = vperm.xlu1 %2414, %v2648_v21  }
 0x238   :  { %2423 = vset.pattern.permute.xlu0 %v701_v29 }
 0x239   :  { %v856_v32 = vpop.permute.xlu2 %855 }
 0x23a   :  { %v1108_v38 = vsel %vm2694_vm1, %v856_v32, -inf }
 0x23f   :  { %2418 = vset.pattern.permute.xlu2 %v689_v30  ;;  %2417 = vset.pattern.permute.xlu1 %v689_v30 }
 0x240   :  { %800 = vperm.xlu0 %2423, %v2648_v21  }
 0x247   :  { %788 = vperm.xlu2 %2418, %v2648_v21   ;;  %691 = vperm.xlu1 %2417, %v2645_v20  }
 0x248   :  { %994 = vperm.xlu0 %2423, %v2663_v25  }
 0x249   :  { %v862_v37 = vpop.permute.xlu2 %861 }
 0x24a   :  { %v1109_v39 = vsel %vm2702_vm2, %v862_v37, -inf  ;;  %v2799_v37 = vadd.s32 120, %v2619_v10 }
 0x24b   :  { %v1182_v40 = vmax.f32 %v1108_v38, %v1109_v39 }
 0x24f   :  { %885 = vperm.xlu2 %2418, %v2651_v22   ;;  %2419 = vset.pattern.permute.xlu1 %v683_v27 }
 0x250   :  { %2427 = vset.pattern.permute.xlu0 %v713_v41 }
 0x251   :  { %v759_v42 = vpop.permute.xlu1 %758 }
 0x252   :  { %v662_v44 = vpop.permute.xlu0 %661  ;;  %v1092_v50 = vsel %vm2694_vm1, %v759_v42, -inf  ;;  %v719_v42 = vadd.s32 80, %v2619_v10 }
 0x253   :  { %v1076_v54 = vsel %vm2694_vm1, %v662_v44, -inf }
 0x257   :  { %982 = vperm.xlu2 %2418, %v2663_v25   ;;  %976 = vperm.xlu1 %2419, %v2663_v25  }
 0x258   :  { %812 = vperm.xlu0 %2427, %v2648_v21  }
 0x259   :  { %v771_v43 = vpop.permute.xlu2 %770 }
 0x25a   :  { %v1094_v58 = vsel %vm2725_vm3, %v771_v43, -inf }
 0x25f   :  { %2422 = vset.pattern.permute.xlu2 %v701_v29  ;;  %2421 = vset.pattern.permute.xlu1 %v695_v28 }
 0x260   :  { %1006 = vperm.xlu0 %2427, %v2663_v25  }
 0x261   :  { %v868_v48 = vpop.permute.xlu2 %867  ;;  %v765_v49 = vpop.permute.xlu1 %764 }
 0x262   :  { %v1110_v51 = vsel %vm2725_vm3, %v868_v48, -inf  ;;  %v1093_v52 = vsel %vm2702_vm2, %v765_v49, -inf  ;;  %v668_v53 = vpop.permute.xlu0 %667 }
 0x263   :  { %v1183_v55 = vmax.f32 %v1182_v40, %v1110_v51  ;;  %v1161_v56 = vmax.f32 %v1092_v50, %v1093_v52  ;;  %v1077_v57 = vsel %vm2702_vm2, %v668_v53, -inf }
 0x264   :  { %v1140_v59 = vmax.f32 %v1076_v54, %v1077_v57 }
 0x265   :  { %v1162_v61 = vmax.f32 %v1161_v56, %v1094_v58 }
 0x267   :  { %703 = vperm.xlu2 %2422, %v2645_v20   ;;  %794 = vperm.xlu1 %2421, %v2648_v21  }
 0x268   :  { %2431 = vset.pattern.permute.xlu0 %v2742_v60 }
 0x26f   :  { %897 = vperm.xlu2 %2422, %v2651_v22   ;;  %891 = vperm.xlu1 %2421, %v2651_v22  }
 0x270   :  { %824 = vperm.xlu0 %2431, %v2648_v21  }
 0x271   :  { %v777_v0 = vpop.permute.xlu2 %776  ;;  %v674_v1 = vpop.permute.xlu1 %673 }
 0x272   :  { %v1095_v2 = vsel %vm2752_vm4, %v777_v0, -inf  ;;  %v1078_v3 = vsel %vm2725_vm3, %v674_v1, -inf  ;;  %v953_v7 = vpop.permute.xlu0 %952 }
 0x273   :  { %v1163_v4 = vmax.f32 %v1162_v61, %v1095_v2  ;;  %v1141_v5 = vmax.f32 %v1140_v59, %v1078_v3  ;;  %v1124_v11 = vsel %vm2694_vm1, %v953_v7, -inf  ;;  %v2830_v59 = vld [vmem:[%s3370_s6 + $0x18] sm:$0xff]  }
 0x274   :  { %v630_v61 = vunpack.c.l.bf16 %v2830_v59  ;;  %v81_v7 = vld [vmem:[%s3370_s6 + $0x34] sm:$0xff]  }
 0x276   :  { %vm2840_vm7 = vcmp.gt.f32.partialorder %v630_v61, 0.0 }
 0x277   :  { %2425 = vset.pattern.permute.xlu2 %v707_v6  ;;  %988 = vperm.xlu1 %2421, %v2663_v25  }
 0x278   :  { %1018 = vperm.xlu0 %2431, %v2663_v25  }
 0x27f   :  { %806 = vperm.xlu2 %2425, %v2648_v21   ;;  %2424 = vset.pattern.permute.xlu1 %v707_v6 }
 0x280   :  { %2435 = vset.pattern.permute.xlu0 %v2765_v8 }
 0x281   :  { %v959_v9 = vpop.permute.xlu1 %958  ;;  %v686_v17 = vpop.permute.xlu2 %685 }
 0x282   :  { %v1125_v12 = vsel %vm2702_vm2, %v959_v9, -inf  ;;  %v965_v13 = vpop.permute.xlu0 %964  ;;  %v1080_v36 = vsel %vm2788_vm5, %v686_v17, -inf  ;;  %vm1229_vm2 = vcmask 1041409  }
 0x283   :  { %v1203_v14 = vmax.f32 %v1124_v11, %v1125_v12  ;;  %v1126_v15 = vsel %vm2725_vm3, %v965_v13, -inf  ;;  %vm1231_vm3 = vcmask 1042434  }
 0x285   :  { %v1204_v16 = vmax.f32 %v1203_v14, %v1126_v15 }
 0x287   :  { %2426 = vset.pattern.permute.xlu2 %v713_v41  ;;  %709 = vperm.xlu1 %2424, %v2645_v20  }
 0x288   :  { %836 = vperm.xlu0 %2435, %v2648_v21  }
 0x28f   :  { %715 = vperm.xlu2 %2426, %v2645_v20   ;;  %903 = vperm.xlu1 %2424, %v2651_v22  }
 0x290   :  { %1030 = vperm.xlu0 %2435, %v2663_v25  }
 0x291   :  { %v971_v27 = vpop.permute.xlu2 %970  ;;  %v680_v28 = vpop.permute.xlu1 %679 }
 0x292   :  { %v1127_v29 = vsel %vm2752_vm4, %v971_v27, -inf  ;;  %v1079_v30 = vsel %vm2752_vm4, %v680_v28, -inf  ;;  %v880_v44 = vpop.permute.xlu0 %879 }
 0x293   :  { %v1205_v32 = vmax.f32 %v1204_v16, %v1127_v29  ;;  %v1142_v35 = vmax.f32 %v1141_v5, %v1079_v30  ;;  %v1112_v48 = vsel %vm2788_vm5, %v880_v44, -inf  ;;  %v631_v5 = vunpack.c.h.bf16 %v2830_v59  ;;  %v2866_v29 = vld [vmem:[%s3370_s6 + $0x20] sm:$0xf] }
 0x294   :  { %v632_v26 = vunpack.c.l.bf16 %v2866_v29 }
 0x295   :  { %v1143_v38 = vmax.f32 %v1142_v35, %v1080_v36  ;;  %vm2850_vm8 = vcmp.gt.f32.partialorder %v631_v5, 0.0 }
 0x296   :  { %vm2875_vm9 = vcmp.gt.f32.partialorder %v632_v26, 0.0 }
 0x297   :  { %909 = vperm.xlu2 %2426, %v2651_v22   ;;  %1000 = vperm.xlu1 %2424, %v2663_v25  }
 0x298   :  { %2439 = vset.pattern.permute.xlu0 %v2799_v37 }
 0x299   :  { %v874_v39 = vpop.permute.xlu1 %873 }
 0x29a   :  { %v1111_v40 = vsel %vm2752_vm4, %v874_v39, -inf  ;;  %vm1233_vm4 = vcmask 1043459  }
 0x29b   :  { %v1184_v41 = vmax.f32 %v1183_v55, %v1111_v40  ;;  %v743_v40 = vadd.s32 112, %v2619_v10 }
 0x29d   :  { %v1185_v51 = vmax.f32 %v1184_v41, %v1112_v48 }
 0x29f   :  { %2429 = vset.pattern.permute.xlu2 %v719_v42  ;;  %2428 = vset.pattern.permute.xlu1 %v719_v42 }
 0x2a0   :  { %848 = vperm.xlu0 %2439, %v2648_v21  }
 0x2a1   :  { %v789_v43 = vpop.permute.xlu2 %788 }
 0x2a2   :  { %v1097_v57 = vsel %vm2815_vm6, %v789_v43, -inf }
 0x2a7   :  { %818 = vperm.xlu2 %2429, %v2648_v21   ;;  %721 = vperm.xlu1 %2428, %v2645_v20  }
 0x2a9   :  { %v886_v50 = vpop.permute.xlu2 %885  ;;  %v783_v52 = vpop.permute.xlu1 %782 }
 0x2aa   :  { %v1113_v53 = vsel %vm2815_vm6, %v886_v50, -inf  ;;  %v1096_v54 = vsel %vm2788_vm5, %v783_v52, -inf }
 0x2ab   :  { %v1186_v55 = vmax.f32 %v1185_v51, %v1113_v53  ;;  %v1164_v56 = vmax.f32 %v1163_v4, %v1096_v54  ;;  %v698_v4 = vpop.permute.xlu0 %697  ;;  %v2899_v54 = vld [vmem:[%s3370_s6 + $0x3c] sm:$0xf] }
 0x2ac   :  { %v1082_v6 = vsel %vm2840_vm7, %v698_v4, -inf }
 0x2ad   :  { %v1165_v58 = vmax.f32 %v1164_v56, %v1097_v57  ;;  %v77_v56 = vld [vmem:[%s3370_s6 + $0x24] sm:$0xff]  }
 0x2ae   :  { %v633_v57 = vunpack.c.l.bf16 %v77_v56 }
 0x2af   :  { %2430 = vset.pattern.permute.xlu2 %v2742_v60  ;;  %915 = vperm.xlu1 %2428, %v2651_v22   ;;  %v731_v60 = vadd.s32 96, %v2619_v10 }
 0x2b0   :  { %vm2911_vm10 = vcmp.gt.f32.partialorder %v633_v57, 0.0 }
 0x2b1   :  { %v983_v63 = vpop.permute.xlu2 %982 }
 0x2b2   :  { %v1129_v17 = vsel %vm2815_vm6, %v983_v63, -inf }
 0x2b3   :  { %v801_v30 = vpop.permute.xlu0 %800 }
 0x2b7   :  { %727 = vperm.xlu2 %2430, %v2645_v20   ;;  %1012 = vperm.xlu1 %2428, %v2663_v25  }
 0x2b9   :  { %v692_v0 = vpop.permute.xlu1 %691 }
 0x2ba   :  { %v1081_v1 = vsel %vm2815_vm6, %v692_v0, -inf }
 0x2bb   :  { %v1144_v2 = vmax.f32 %v1143_v38, %v1081_v1 }
 0x2bd   :  { %v1145_v11 = vmax.f32 %v1144_v2, %v1082_v6 }
 0x2bf   :  { %921 = vperm.xlu2 %2430, %v2651_v22   ;;  %2432 = vset.pattern.permute.xlu1 %v731_v60 }
 0x2c1   :  { %v704_v9 = vpop.permute.xlu2 %703 }
 0x2c2   :  { %v1083_v12 = vsel %vm2850_vm8, %v704_v9, -inf  ;;  %v995_v9 = vpop.permute.xlu0 %994 }
 0x2c3   :  { %v1146_v13 = vmax.f32 %v1145_v11, %v1083_v12  ;;  %v1131_v11 = vsel %vm2850_vm8, %v995_v9, -inf }
 0x2c7   :  { %2433 = vset.pattern.permute.xlu2 %v731_v60  ;;  %733 = vperm.xlu1 %2432, %v2645_v20  }
 0x2c9   :  { %v977_v14 = vpop.permute.xlu1 %976  ;;  %v898_v28 = vpop.permute.xlu2 %897 }
 0x2ca   :  { %v1128_v15 = vsel %vm2788_vm5, %v977_v14, -inf  ;;  %v1115_v10 = vsel %vm2850_vm8, %v898_v28, -inf  ;;  %vm1362_vm5 = vcmask 1043456  }
 0x2cb   :  { %v1206_v16 = vmax.f32 %v1205_v32, %v1128_v15  ;;  %2282 = vmatpush.msk.msrb.mxu1 %vm1362_vm5, %v2638_v18  ;;  %2331 = vmatpush.msk.msra.mxu0 %vm1362_vm5, %v2638_v18 }
 0x2cd   :  { %v1207_v27 = vmax.f32 %v1206_v16, %v1129_v17  ;;  %v813_v16 = vpop.permute.xlu0 %812 }
 0x2cf   :  { %830 = vperm.xlu2 %2433, %v2648_v21   ;;  %927 = vperm.xlu1 %2432, %v2651_v22  }
 0x2d7   :  { %2434 = vset.pattern.permute.xlu2 %v2765_v8  ;;  %1024 = vperm.xlu1 %2432, %v2663_v25   ;;  %v1099_v8 = vsel %vm2850_vm8, %v801_v30, -inf  ;;  %v638_v30 = vunpack.c.h.bf16 %v81_v7 }
 0x2d9   :  { %v795_v32 = vpop.permute.xlu1 %794  ;;  %v807_v38 = vpop.permute.xlu2 %806  ;;  %vm2983_vm15 = vcmp.gt.f32.partialorder %v638_v30, 0.0 }
 0x2da   :  { %v1098_v35 = vsel %vm2840_vm7, %v795_v32, -inf  ;;  %v1100_v42 = vsel %vm2875_vm9, %v807_v38, -inf }
 0x2db   :  { %v1166_v39 = vmax.f32 %v1165_v58, %v1098_v35  ;;  %v637_v35 = vunpack.c.l.bf16 %v81_v7 }
 0x2dd   :  { %v1167_v41 = vmax.f32 %v1166_v39, %v1099_v8  ;;  %vm2977_vm14 = vcmp.gt.f32.partialorder %v637_v35, 0.0 }
 0x2df   :  { %739 = vperm.xlu2 %2434, %v2645_v20   ;;  %2436 = vset.pattern.permute.xlu1 %v743_v40  ;;  %v2885_v43 = vmax.f32 %v1167_v41, %v1100_v42  ;;  %v634_v42 = vunpack.c.h.bf16 %v77_v56 }
 0x2e1   :  { %v892_v44 = vpop.permute.xlu1 %891  ;;  %vm2948_vm11 = vcmp.gt.f32.partialorder %v634_v42, 0.0 }
 0x2e2   :  { %v1114_v48 = vsel %vm2840_vm7, %v892_v44, -inf }
 0x2e3   :  { %v1187_v49 = vmax.f32 %v1186_v55, %v1114_v48  ;;  %v639_v55 = vunpack.c.l.bf16 %v2899_v54 }
 0x2e5   :  { %v1188_v50 = vmax.f32 %v1187_v49, %v1115_v10  ;;  %1240 = vmatpush.xpose.msrb.mxu3 %v639_v55  ;;  %vm2991_vm1 = vcmp.gt.f32.partialorder %v639_v55, 0.0 }
 0x2e7   :  { %933 = vperm.xlu2 %2434, %v2651_v22   ;;  %745 = vperm.xlu1 %2436, %v2645_v20  }
 0x2e9   :  { %v989_v51 = vpop.permute.xlu1 %988  ;;  %v716_v58 = vpop.permute.xlu2 %715  ;;  %1241 = vmatpush.xpose.msrb.mxu3 %v638_v30 }
 0x2ea   :  { %v1130_v52 = vsel %vm2840_vm7, %v989_v51, -inf  ;;  %v1085_v60 = vsel %vm2911_vm10, %v716_v58, -inf  ;;  %vm1313_vm7 = vcmask 31744  }
 0x2eb   :  { %v1208_v53 = vmax.f32 %v1207_v27, %v1130_v52 }
 0x2ed   :  { %1242 = vmatpush.xpose.msrb.mxu3 %v637_v35 }
 0x2ef   :  { %2437 = vset.pattern.permute.xlu2 %v743_v40  ;;  %939 = vperm.xlu1 %2436, %v2651_v22  }
 0x2f1   :  { %v2932_v15 = vpop.permute.xlu2 %909 }
 0x2f7   :  { %842 = vperm.xlu2 %2437, %v2648_v21   ;;  %1036 = vperm.xlu1 %2436, %v2663_v25  }
 0x2f9   :  { %v710_v63 = vpop.permute.xlu1 %709 }
 0x2fa   :  { %v1084_v0 = vsel %vm2875_vm9, %v710_v63, -inf }
 0x2fb   :  { %v1147_v2 = vmax.f32 %v1146_v13, %v1084_v0  ;;  %v1209_v13 = vmax.f32 %v1208_v53, %v1131_v11 }
 0x2fd   :  { %v1148_v3 = vmax.f32 %v1147_v2, %v1085_v60 }
 0x2ff   :  { %2438 = vset.pattern.permute.xlu2 %v2799_v37  ;;  %2440 = vset.pattern.permute.xlu1 %v2799_v37 }
 0x301   :  { %v904_v21 = vpop.permute.xlu1 %903  ;;  %v819_v17 = vpop.permute.xlu2 %818 }
 0x302   :  { %v1116_v4 = vsel %vm2875_vm9, %v904_v21, -inf  ;;  %v1102_v51 = vsel %vm2948_vm11, %v819_v17, -inf  ;;  %v1117_v17 = vsel %vm2911_vm10, %v2932_v15, -inf }
 0x303   :  { %v2921_v6 = vmax.f32 %v1188_v50, %v1116_v4  ;;  %v1101_v50 = vsel %vm2911_vm10, %v813_v16, -inf }
 0x304   :  { %v1169_v52 = vmax.f32 %v2885_v43, %v1101_v50 }
 0x306   :  { %v1170_v56 = vmax.f32 %v1169_v52, %v1102_v51 }
 0x307   :  { %751 = vperm.xlu2 %2438, %v2645_v20   ;;  %1042 = vperm.xlu1 %2440, %v2663_v25   ;;  %v2934_v20 = vpop.permute.xlu0 %1006 }
 0x309   :  { %v1001_v12 = vpop.permute.xlu1 %1000 }
 0x30a   :  { %v1132_v14 = vsel %vm2875_vm9, %v1001_v12, -inf  ;;  %v1958_v12 = vld [vmem:[%s3373_s4 + $0x10] sm:$0xff] }
 0x30b   :  { %v2929_v37 = vmax.f32 %v1209_v13, %v1132_v14 }
 0x30f   :  { %945 = vperm.xlu2 %2438, %v2651_v22   ;;  %v825_v32 = vpop.permute.xlu0 %824  ;;  %v79_v22 = vld [vmem:[%s3370_s6 + $0x2c] sm:$0xff]  }
 0x310   :  { %v636_v38 = vunpack.c.h.bf16 %v79_v22  ;;  %v635_v8 = vunpack.c.l.bf16 %v79_v22 }
 0x311   :  { %v728_v25 = vpop.permute.xlu2 %727 }
 0x312   :  { %1243 = vmatpush.xpose.msrb.mxu3 %v636_v38  ;;  %vm2959_vm12 = vcmp.gt.f32.partialorder %v635_v8, 0.0  ;;  %vm2963_vm13 = vcmp.gt.f32.partialorder %v636_v38, 0.0 }
 0x313   :  { %v1103_v29 = vsel %vm2959_vm12, %v825_v32, -inf  ;;  %v1087_v59 = vsel %vm2959_vm12, %v728_v25, -inf  ;;  %v1190_v25 = vmax.f32 %v2921_v6, %v1117_v17 }
 0x314   :  { %v1171_v43 = vmax.f32 %v1170_v56, %v1103_v29 }
 0x316   :  { %1244 = vmatpush.xpose.msrb.mxu3 %v635_v8 }
 0x317   :  { %v2946_v40 = vpop.permute.xlu0 %1018 }
 0x318   :  { %v1135_v1 = vsel %vm2959_vm12, %v2946_v40, -inf  ;;  %v2458_v40 = vmov 0.0  }
 0x319   :  { %v722_v27 = vpop.permute.xlu1 %721  ;;  %v2939_v36 = vpop.permute.xlu2 %921  ;;  %33 = vst [vmem:[#allocation2] sm:$0xf] %v2458_v40 }
 0x31a   :  { %1245 = vmatpush.xpose.msrb.mxu3 %v634_v42  ;;  %v1086_v2 = vsel %vm2948_vm11, %v722_v27, -inf  ;;  %v1119_v15 = vsel %vm2959_vm12, %v2939_v36, -inf  ;;  %36 = vst.msk [vmem:[#allocation4] sm:$0xff] %vm35_vm0, %v2458_v40 }
 0x31b   :  { %v1149_v4 = vmax.f32 %v1148_v3, %v1086_v2  ;;  %37 = vst.msk [vmem:[#allocation4 + $0x8] sm:$0xff] %vm35_vm0, %v2458_v40 }
 0x31c   :  { %38 = vst.msk [vmem:[#allocation4 + $0x10] sm:$0xff] %vm35_vm0, %v2458_v40 }
 0x31d   :  { %v1150_v54 = vmax.f32 %v1149_v4, %v1087_v59  ;;  %39 = vst.msk [vmem:[#allocation4 + $0x18] sm:$0xff] %vm35_vm0, %v2458_v40 }
 0x31e   :  { %1246 = vmatpush.xpose.msrb.mxu3 %v633_v57  ;;  %40 = vst.msk [vmem:[#allocation4 + $0x20] sm:$0xff] %vm35_vm0, %v2458_v40 }
 0x31f   :  { %v837_v48 = vpop.permute.xlu0 %836  ;;  %41 = vst.msk [vmem:[#allocation4 + $0x28] sm:$0xff] %vm35_vm0, %v2458_v40 }
 0x320   :  { %v1105_v9 = vsel %vm2977_vm14, %v837_v48, -inf  ;;  %42 = vst.msk [vmem:[#allocation4 + $0x30] sm:$0xff] %vm35_vm0, %v2458_v40 }
 0x321   :  { %v916_v28 = vpop.permute.xlu1 %915  ;;  %43 = vst.msk [vmem:[#allocation4 + $0x38] sm:$0xff] %vm35_vm0, %v2458_v40 }
 0x322   :  { %1247 = vmatpush.xpose.msrb.mxu3 %v632_v26  ;;  %44 = vst.msk [vmem:[#allocation4 + $0x40] sm:$0xff] %vm35_vm0, %v2458_v40 }
 0x323   :  { %45 = vst.msk [vmem:[#allocation4 + $0x48] sm:$0xff] %vm35_vm0, %v2458_v40 }
 0x324   :  { %46 = vst.msk [vmem:[#allocation4 + $0x50] sm:$0xff] %vm35_vm0, %v2458_v40 }
 0x325   :  { %47 = vst.msk [vmem:[#allocation4 + $0x58] sm:$0xff] %vm35_vm0, %v2458_v40 }
 0x326   :  { %1248 = vmatpush.xpose.msrb.mxu3 %v631_v5  ;;  %48 = vst.msk [vmem:[#allocation4 + $0x60] sm:$0xff] %vm35_vm0, %v2458_v40 }
 0x327   :  { %v2967_v63 = vpop.permute.xlu0 %1030  ;;  %49 = vst.msk [vmem:[#allocation4 + $0x68] sm:$0xff] %vm35_vm0, %v2458_v40 }
 0x328   :  { %50 = vst.msk [vmem:[#allocation4 + $0x70] sm:$0xff] %vm35_vm0, %v2458_v40 }
 0x329   :  { %v2944_v39 = vpop.permute.xlu1 %1012  ;;  %v831_v41 = vpop.permute.xlu2 %830  ;;  %51 = vst.msk [vmem:[#allocation4 + $0x78] sm:$0xff] %vm35_vm0, %v2458_v40 }
 0x32a   :  { %v1104_v26 = vsel %vm2963_vm13, %v831_v41, -inf  ;;  %1249 = vmatpush.xpose.msrb.mxu3 %v630_v61  ;;  %v1133_v41 = vsel %vm2911_vm10, %v2934_v20, -inf }
 0x32b   :  { %v1172_v21 = vmax.f32 %v1171_v43, %v1104_v26  ;;  %v1211_v42 = vmax.f32 %v2929_v37, %v1133_v41  ;;  %v2460_v41 = vmov 0  }
 0x32c   :  { %2443 = vset.pattern.permute.xlu1 %v2460_v41 }
 0x32d   :  { %v1173_v16 = vmax.f32 %v1172_v21, %v1105_v9  ;;  %1984 = vperm.xlu1 %2443, %v1958_v12  }
 0x32e   :  { %1250 = vmatpush.xpose.msrb.mxu3 %v629_v47  ;;  %v1118_v47 = vsel %vm2948_vm11, %v916_v28, -inf }
 0x32f   :  { %v849_v11 = vpop.permute.xlu0 %848  ;;  %v1191_v32 = vmax.f32 %v1190_v25, %v1118_v47 }
 0x330   :  { %v1107_v27 = vsel %vm2991_vm1, %v849_v11, -inf }
 0x332   :  { %1251 = vmatpush.xpose.msrb.mxu3 %v628_v24  ;;  %v1192_v24 = vmax.f32 %v1191_v32, %v1119_v15  ;;  %v1224_v15 = vld [vmem:[#allocation2] sm:$0xf] }
 0x336   :  { %1252 = vmatpush.xpose.msrb.mxu3 %v627_v62  ;;  %v1134_v62 = vsel %vm2948_vm11, %v2944_v39, -inf }
 0x339   :  { %v734_v44 = vpop.permute.xlu1 %733  ;;  %v740_v49 = vpop.permute.xlu2 %739 }
 0x33a   :  { %v1088_v61 = vsel %vm2963_vm13, %v734_v44, -inf  ;;  %v1089_v35 = vsel %vm2977_vm14, %v740_v49, -inf  ;;  %1253 = vmatpush.xpose.msrb.mxu3 %v626_v46  ;;  %v1212_v44 = vmax.f32 %v1211_v42, %v1134_v62  ;;  %v2395_v62 = vld [vmem:[%s3374_s2 + $0x38] sm:$0xff]  ;;  %v2394_v42 = vld [vmem:[%s3374_s2 + $0x30] sm:$0xff] }
 0x33b   :  { %v1151_v7 = vmax.f32 %v1150_v54, %v1088_v61  ;;  %487 = vmatpush.bf16.msra.mxu2 %v2395_v62 }
 0x33c   :  { %v1213_v39 = vmax.f32 %v1212_v44, %v1135_v1  ;;  %v2393_v44 = vld [vmem:[%s3374_s2 + $0x28] sm:$0xff] }
 0x33d   :  { %v1152_v38 = vmax.f32 %v1151_v7, %v1089_v35 }
 0x33e   :  { %1254 = vmatpush.xpose.msrb.mxu3 %v625_v34 }
 0x33f   :  { %488 = vmatpush.bf16.msra.mxu2 %v2394_v42 }
 0x341   :  { %v928_v57 = vpop.permute.xlu1 %927  ;;  %v934_v0 = vpop.permute.xlu2 %933 }
 0x342   :  { %v1120_v6 = vsel %vm2963_vm13, %v928_v57, -inf  ;;  %v1121_v49 = vsel %vm2977_vm14, %v934_v0, -inf  ;;  %1255 = vmatpush.xpose.msrb.mxu3 %v624_v33  ;;  %v1137_v0 = vsel %vm2977_vm14, %v2967_v63, -inf }
 0x343   :  { %v1193_v36 = vmax.f32 %v1192_v24, %v1120_v6  ;;  %489 = vmatpush.bf16.msra.mxu2 %v2393_v44 }
 0x345   :  { %v1194_v51 = vmax.f32 %v1193_v36, %v1121_v49  ;;  %v1960_v36 = vld [vmem:[%s3373_s4 + $0x20] sm:$0xff]  ;;  %v1963_v49 = vld [vmem:[%s3373_s4 + $0x38] sm:$0xff] }
 0x346   :  { %1994 = vperm.xlu1 %2443, %v1960_v36   ;;  %2265 = vmatpush.msk.msra.mxu3 %vm1362_vm5, %v2638_v18 }
 0x349   :  { %v1025_v13 = vpop.permute.xlu1 %1024 }
 0x34a   :  { %v1136_v37 = vsel %vm2963_vm13, %v1025_v13, -inf }
 0x34b   :  { %v1214_v56 = vmax.f32 %v1213_v39, %v1136_v37  ;;  %v2389_v39 = vld [vmem:[%s3374_s2 + $0x8] sm:$0xff] }
 0x34d   :  { %v1215_v2 = vmax.f32 %v1214_v56, %v1137_v0 }
 0x34e   :  { %2009 = vperm.xlu1 %2443, %v1963_v49  }
 0x351   :  { %v843_v14 = vpop.permute.xlu2 %842 }
 0x352   :  { %v1106_v3 = vsel %vm2983_vm15, %v843_v14, -inf }
 0x353   :  { %v1174_v55 = vmax.f32 %v1173_v16, %v1106_v3  ;;  %v2459_v3 = vmov 1.0  }
 0x354   :  { %34 = vst [vmem:[#allocation3] sm:$0xf] %v2459_v3  ;;  %v2455_v3 = vld [vmem:[%s3371_s5 + $0x28] sm:$0xff] }
 0x355   :  { %v1175_v30 = vmax.f32 %v1174_v55, %v1107_v27 }
 0x357   :  { %v1176_v28 = vrot.slane %v1175_v30, 4 }
 0x359   :  { %v746_v22 = vpop.permute.xlu1 %745  ;;  %v1177_v48 = vmax.f32 %v1175_v30, %v1176_v28 }
 0x35a   :  { %v1090_v23 = vsel %vm2983_vm15, %v746_v22, -inf }
 0x35b   :  { %v1153_v8 = vmax.f32 %v1152_v38, %v1090_v23  ;;  %v1178_v10 = vrot.slane %v1177_v48, 2 }
 0x35d   :  { %v1179_v34 = vmax.f32 %v1177_v48, %v1178_v10  ;;  %v2392_v48 = vld [vmem:[%s3374_s2 + $0x20] sm:$0xff] }
 0x35e   :  { %490 = vmatpush.bf16.msra.mxu2 %v2392_v48  ;;  %v2388_v10 = vld [vmem:[%s3374_s2] sm:$0xff] }
 0x35f   :  { %v1180_v21 = vrot.slane %v1179_v34, 1 }
 0x361   :  { %v752_v20 = vpop.permute.xlu2 %751  ;;  %v940_v50 = vpop.permute.xlu1 %939  ;;  %v1181_v13 = vmax.f32 %v1179_v34, %v1180_v21 }
 0x362   :  { %v1091_v45 = vsel %vm2991_vm1, %v752_v20, -inf  ;;  %v1122_v46 = vsel %vm2983_vm15, %v940_v50, -inf }
 0x363   :  { %v1154_v52 = vmax.f32 %v1153_v8, %v1091_v45  ;;  %v1195_v53 = vmax.f32 %v1194_v51, %v1122_v46  ;;  %v1966_v51 = vld [vmem:[%s3373_s4 + $0x50] sm:$0xff]  ;;  %v2391_v46 = vld [vmem:[%s3374_s2 + $0x18] sm:$0xff] }
 0x364   :  { %2024 = vperm.xlu1 %2443, %v1966_v51   ;;  %491 = vmatpush.bf16.msra.mxu2 %v2391_v46 }
 0x365   :  { %v1155_v57 = vrot.slane %v1154_v52, 4 }
 0x367   :  { %v1156_v58 = vmax.f32 %v1154_v52, %v1155_v57  ;;  %v2450_v52 = vld [vmem:[%s3371_s5] sm:$0xff] }
 0x369   :  { %v1157_v29 = vrot.slane %v1156_v58, 2  ;;  %v946_v26 = vpop.permute.xlu2 %945  ;;  %v1037_v43 = vpop.permute.xlu1 %1036 }
 0x36a   :  { %v1123_v31 = vsel %vm2991_vm1, %v946_v26, -inf  ;;  %v1138_v33 = vsel %vm2983_vm15, %v1037_v43, -inf  ;;  %v2452_v43 = vld [vmem:[%s3371_s5 + $0x10] sm:$0xff] }
 0x36b   :  { %v1158_v4 = vmax.f32 %v1156_v58, %v1157_v29  ;;  %v1196_v60 = vmax.f32 %v1195_v53, %v1123_v31  ;;  %v1216_v63 = vmax.f32 %v1215_v2, %v1138_v33  ;;  %v1263_v53 = vld [vmem:[#allocation3] sm:$0xf] }
 0x36d   :  { %v1159_v9 = vrot.slane %v1158_v4, 1  ;;  %v1197_v11 = vrot.slane %v1196_v60, 4 }
 0x36f   :  { %v1160_v5 = vmax.f32 %v1158_v4, %v1159_v9  ;;  %v1198_v14 = vmax.f32 %v1196_v60, %v1197_v11 }
 0x371   :  { %v1199_v16 = vrot.slane %v1198_v14, 2  ;;  %v1230_v59 = vsel %vm1229_vm2, %v1181_v13, %v1160_v5  ;;  %v2453_v13 = vld [vmem:[%s3371_s5 + $0x18] sm:$0xff] }
 0x373   :  { %v1200_v61 = vmax.f32 %v1198_v14, %v1199_v16  ;;  %v2454_v16 = vld [vmem:[%s3371_s5 + $0x20] sm:$0xff] }
 0x375   :  { %v1201_v54 = vrot.slane %v1200_v61, 1 }
 0x377   :  { %v1202_v55 = vmax.f32 %v1200_v61, %v1201_v54 }
 0x379   :  { %v1043_v17 = vpop.permute.xlu1 %1042  ;;  %v1232_v27 = vsel %vm1231_vm3, %v1202_v55, %v1230_v59 }
 0x37a   :  { %v1139_v47 = vsel %vm2991_vm1, %v1043_v17, -inf  ;;  %v2456_v17 = vld [vmem:[%s3371_s5 + $0x30] sm:$0xff] }
 0x37b   :  { %v1217_v25 = vmax.f32 %v1216_v63, %v1139_v47 }
 0x37d   :  { %v1218_v7 = vrot.slane %v1217_v25, 4 }
 0x37f   :  { %v1219_v30 = vmax.f32 %v1217_v25, %v1218_v7  ;;  %v2457_v25 = vld [vmem:[%s3371_s5 + $0x38] sm:$0xff] }
 0x381   :  { %v1220_v32 = vrot.slane %v1219_v30, 2 }
 0x383   :  { %v1221_v35 = vmax.f32 %v1219_v30, %v1220_v32 }
 0x385   :  { %v1222_v22 = vrot.slane %v1221_v35, 1 }
 0x387   :  { %v1223_v38 = vmax.f32 %v1221_v35, %v1222_v22 }
 0x389   :  { %v1234_v6 = vsel %vm1233_vm4, %v1223_v38, %v1232_v27 }
 0x38a   :  { %v1236_v23 = vmax.f32 %v1224_v15, %v1234_v6 }
 0x38c   :  { %v1237_v24 = vsub.f32 %v1224_v15, %v1236_v23  ;;  %1256 = vmatmul.f32.vlgmr.msrb.gmra.mxu3 %v1236_v23  ;;  %1760 = vst [vmem:[#allocation2] sm:$0xf] %v1236_v23 }
 0x38d   :  { %2396 = vmatpush.msk.msrb.mxu3 %vm1362_vm5, %v2638_v18  ;;  %v2451_v18 = vld [vmem:[%s3371_s5 + $0x8] sm:$0xff] }
 0x38e   :  { %v1238_v28 = vmul.f32 1.442695, %v1237_v24 }
 0x390   :  { %2444 = vpow2.f32 %v1238_v28 }
 0x396   :  { %v2445_v8 = vpop.eup %2444 }
 0x397   :  { %1454 = vxpose.xlu0.b32.start.end [1/1] (short) %v2445_v8, 128  ;;  %v1264_v40 = vmul.f32 %v2445_v8, %v1263_v53 }
 0x39f   :  { %v3154_v24 = vpop.permute.xlu1 %1984 }
 0x3fe   :  { %2442 = vset.pattern.permute.xlu0 %v2460_v41 }
 0x40f   :  { %v1257_v1 = vpop.f32.mrf.mxu3 }
 0x410   :  { %v1260_v20 = vsub.f32 %v2642_v19, %v1257_v1  ;;  %v2390_v19 = vld [vmem:[%s3374_s2 + $0x10] sm:$0xff] }
 0x411   :  { %492 = vmatpush.bf16.msra.mxu2 %v2390_v19 }
 0x412   :  { %v1261_v50 = vmul.f32 1.442695, %v1260_v20 }
 0x414   :  { %2446 = vpow2.f32 %v1261_v50 }
 0x415   :  { %493 = vmatpush.bf16.msra.mxu2 %v2389_v39 }
 0x419   :  { %494 = vmatpush.bf16.msra.mxu2 %v2388_v10 }
 0x41a   :  { %v2447_v37 = vpop.eup %2446 }
 0x41b   :  { %1281 = vxpose.xlu2.b32.start.end [1/1] (short) %v2447_v37, 128  ;;  %v1265_v45 = vpack.c.bf16 %v2447_v37, %v2447_v37 }
 0x41c   :  { %495 = vmatmul.bf16.vlgmr.msra.gmra.mxu2 %v2450_v52 }
 0x41d   :  { %1274 = vmatmul.bf16.vlgmr.msrb.gmra.mxu0 %v1265_v45 }
 0x42c   :  { %500 = vmatmul.bf16.gmra.mxu2 %v2451_v18 }
 0x43c   :  { %505 = vmatmul.bf16.gmra.mxu2 %v2452_v43 }
 0x44c   :  { %510 = vmatmul.bf16.gmra.mxu2 %v2453_v13 }
 0x45c   :  { %515 = vmatmul.bf16.gmra.mxu2 %v2454_v16 }
 0x46c   :  { %520 = vmatmul.bf16.gmra.mxu2 %v2455_v3 }
 0x47c   :  { %525 = vmatmul.bf16.gmra.mxu2 %v2456_v17 }
 0x47d   :  { %2441 = vset.pattern.permute.xlu2 %v2460_v41  ;;  %v3158_v41 = vpop.permute.xlu1 %1994 }
 0x485   :  { %v3164_v49 = vpop.permute.xlu1 %2009 }
 0x48c   :  { %530 = vmatmul.bf16.gmra.mxu2 %v2457_v25 }
 0x48d   :  { %v3170_v37 = vpop.permute.xlu1 %2024 }
 0x49a   :  { %v1275_v56 = vpop.f32.mrf.mxu0 }
 0x49b   :  { %v1279_v57 = vadd.f32 %v1275_v56, %v1264_v40 }
 0x49d   :  { %1280 = vst [vmem:[#allocation3] sm:$0xf] %v1279_v57 }
 0x49f   :  { %v496_v35 = vpop.f32.mrf.mxu2 }
 0x4a2   :  { %v1277_v34 = vpop.f32.mrf.mxu0 }
 0x4a4   :  { %v1764_v58 = vld [vmem:[#allocation3] sm:$0xf] }
 0x4a5   :  { %2448 = vrcp.f32 %v1764_v58  ;;  %v1776_v2 = vand.u32 2147483648, %v1764_v58  ;;  %v1774_v33 = vand.u32 2147483647, %v1764_v58  ;;  %vm1770_vm8 = vweird.f32 %v1764_v58 }
 0x4a7   :  { %v1777_v4 = vor.u32 1.1754944e-38, %v1776_v2  ;;  %vm1775_vm10 = vcmp.eq.f32.partialorder %v1774_v33, 8.507059e+37  ;;  %v498_v15 = vpop.f32.mrf.mxu2 }
 0x4ab   :  { %v2449_v0 = vpop.eup %2448 }
 0x4ac   :  { %v1766_v29 = vmul.f32 %v2449_v0, %v1764_v58  ;;  %vm1771_vm6 = vweird.f32 %v2449_v0 }
 0x4ad   :  { %vm1772_vm9 = vmor %vm1770_vm8, %vm1771_vm6 }
 0x4ae   :  { %v1767_v26 = vsub.f32 1.0, %v1766_v29 }
 0x4af   :  { %v501_v23 = vpop.f32.mrf.mxu2 }
 0x4b0   :  { %v1768_v31 = vmul.f32 %v2449_v0, %v1767_v26 }
 0x4b2   :  { %v1769_v21 = vadd.f32 %v2449_v0, %v1768_v31 }
 0x4b4   :  { %v1297_v60 = vpop.trf.xlu2  ;;  %v1773_v63 = vsel %vm1772_vm9, %v2449_v0, %v1769_v21 }
 0x4b5   :  { %2266 = vmatmul.msk.f32.vlgmr.msra.gmra.mxu3 %vm1313_vm7, %v1297_v60  ;;  %v1778_v9 = vsel %vm1775_vm10, %v1777_v4, %v1773_v63 }
 0x4b6   :  { %1779 = vxpose.xlu1.b32.start.end [1/1] (short) %v1778_v9, 128 }
 0x4b7   :  { %v503_v8 = vpop.f32.mrf.mxu2 }
 0x4bc   :  { %v1298_v11 = vpop.trf.xlu2 }
 0x4bd   :  { %2267 = vmatmul.msk.f32.gmra.mxu3 %vm1313_vm7, %v1298_v11  ;;  %v1969_v11 = vld [vmem:[%s3373_s4 + $0x68] sm:$0xff] }
 0x4bf   :  { %v506_v36 = vpop.f32.mrf.mxu2 }
 0x4c4   :  { %v1299_v5 = vpop.trf.xlu2 }
 0x4c5   :  { %2268 = vmatmul.msk.f32.gmra.mxu3 %vm1313_vm7, %v1299_v5 }
 0x4c7   :  { %v508_v20 = vpop.f32.mrf.mxu2 }
 0x4cc   :  { %v1300_v14 = vpop.trf.xlu2 }
 0x4cd   :  { %2269 = vmatmul.msk.f32.gmra.mxu3 %vm1313_vm7, %v1300_v14 }
 0x4cf   :  { %v511_v46 = vpop.f32.mrf.mxu2 }
 0x4d4   :  { %v1301_v59 = vpop.trf.xlu2 }
 0x4d5   :  { %2270 = vmatmul.msk.f32.gmra.mxu3 %vm1313_vm7, %v1301_v59 }
 0x4d7   :  { %v513_v53 = vpop.f32.mrf.mxu2 }
 0x4dc   :  { %v1302_v61 = vpop.trf.xlu2 }
 0x4dd   :  { %2271 = vmatmul.msk.f32.gmra.mxu3 %vm1313_vm7, %v1302_v61 }
 0x4df   :  { %v516_v58 = vpop.f32.mrf.mxu2 }
 0x4e4   :  { %v1303_v54 = vpop.trf.xlu2 }
 0x4e5   :  { %2272 = vmatmul.msk.f32.gmra.mxu3 %vm1313_vm7, %v1303_v54 }
 0x4e7   :  { %v518_v31 = vpop.f32.mrf.mxu2 }
 0x4ec   :  { %v1304_v55 = vpop.trf.xlu2 }
 0x4ed   :  { %2273 = vmatmul.msk.f32.gmra.mxu3 %vm1313_vm7, %v1304_v55 }
 0x4ef   :  { %v521_v60 = vpop.f32.mrf.mxu2 }
 0x4f4   :  { %v1305_v27 = vpop.trf.xlu2 }
 0x4f5   :  { %2274 = vmatmul.msk.f32.gmra.mxu3 %vm1313_vm7, %v1305_v27 }
 0x4f7   :  { %v523_v13 = vpop.f32.mrf.mxu2 }
 0x4fc   :  { %v1306_v47 = vpop.trf.xlu2 }
 0x4fd   :  { %2275 = vmatmul.msk.f32.gmra.mxu3 %vm1313_vm7, %v1306_v47 }
 0x4ff   :  { %v526_v59 = vpop.f32.mrf.mxu2 }
 0x504   :  { %v1307_v7 = vpop.trf.xlu2 }
 0x505   :  { %2276 = vmatmul.msk.f32.gmra.mxu3 %vm1313_vm7, %v1307_v7 }
 0x507   :  { %v528_v55 = vpop.f32.mrf.mxu2 }
 0x50c   :  { %v1308_v30 = vpop.trf.xlu2 }
 0x50d   :  { %2277 = vmatmul.msk.f32.gmra.mxu3 %vm1313_vm7, %v1308_v30 }
 0x50f   :  { %v531_v47 = vpop.f32.mrf.mxu2 }
 0x514   :  { %v1309_v32 = vpop.trf.xlu2 }
 0x515   :  { %2278 = vmatmul.msk.f32.gmra.mxu3 %vm1313_vm7, %v1309_v32 }
 0x517   :  { %v533_v30 = vpop.f32.mrf.mxu2 }
 0x51c   :  { %v1310_v22 = vpop.trf.xlu2 }
 0x51d   :  { %2279 = vmatmul.msk.f32.gmra.mxu3 %vm1313_vm7, %v1310_v22 }
 0x524   :  { %v1311_v38 = vpop.trf.xlu2 }
 0x525   :  { %2280 = vmatmul.msk.f32.gmra.mxu3 %vm1313_vm7, %v1311_v38 }
 0x52c   :  { %v1312_v6 = vpop.trf.xlu2 }
 0x52d   :  { %2281 = vmatmul.msk.f32.gmra.mxu3 %vm1313_vm7, %v1312_v6 }
 0x538   :  { %v1382_v28 = vpop.f32.mrf.mxu3 }
 0x539   :  { %v3156_v12 = vmul.f32 %v1382_v28, %v496_v35 }
 0x540   :  { %v1385_v62 = vpop.f32.mrf.mxu3 }
 0x541   :  { %v3160_v42 = vmul.f32 %v1385_v62, %v498_v15 }
 0x543   :  { %v1446_v44 = vpack.c.bf16 %v3160_v42, %v3156_v12  ;;  %v2365_v12 = vld [vmem:[%s3375_s7 + $0x8] sm:$0xff] }
 0x548   :  { %v1388_v48 = vpop.f32.mrf.mxu3 }
 0x549   :  { %v3166_v1 = vmul.f32 %v1388_v48, %v501_v23  ;;  %v1470_v23 = vpop.trf.xlu0 }
 0x54a   :  { %2283 = vmatmul.msk.f32.vlgmr.msrb.gmra.mxu1 %vm1313_vm7, %v1470_v23 }
 0x550   :  { %v1391_v50 = vpop.f32.mrf.mxu3 }
 0x551   :  { %v3168_v51 = vmul.f32 %v1391_v50, %v503_v8 }
 0x553   :  { %v1447_v45 = vpack.c.bf16 %v3168_v51, %v3166_v1  ;;  %v1957_v1 = vld [vmem:[%s3373_s4 + $0x8] sm:$0xff] }
 0x554   :  { %1979 = vperm.xlu0 %2442, %v1957_v1  }
 0x558   :  { %v1394_v19 = vpop.f32.mrf.mxu3 }
 0x559   :  { %v3174_v39 = vmul.f32 %v1394_v19, %v506_v36 }
 0x55a   :  { %v1795_v10 = vpop.trf.xlu1 }
 0x55b   :  { %2332 = vmatmul.msk.f32.vlgmr.msra.gmra.mxu0 %vm1313_vm7, %v1795_v10 }
 0x560   :  { %v1397_v52 = vpop.f32.mrf.mxu3 }
 0x561   :  { %v3177_v40 = vmul.f32 %v1397_v52, %v508_v20 }
 0x562   :  { %v1796_v56 = vpop.trf.xlu1 }
 0x563   :  { %v1448_v57 = vpack.c.bf16 %v3177_v40, %v3174_v39  ;;  %2333 = vmatmul.msk.f32.gmra.mxu0 %vm1313_vm7, %v1796_v56 }
 0x568   :  { %v1400_v18 = vpop.f32.mrf.mxu3 }
 0x569   :  { %v3182_v34 = vmul.f32 %v1400_v18, %v511_v46  ;;  %v1471_v46 = vpop.trf.xlu0  ;;  %v2364_v18 = vld [vmem:[%s3375_s7] sm:$0xff] }
 0x56a   :  { %v1797_v0 = vpop.trf.xlu1  ;;  %2284 = vmatmul.msk.f32.gmra.mxu1 %vm1313_vm7, %v1471_v46 }
 0x56b   :  { %2334 = vmatmul.msk.f32.gmra.mxu0 %vm1313_vm7, %v1797_v0  ;;  %v2367_v0 = vld [vmem:[%s3375_s7 + $0x18] sm:$0xff] }
 0x570   :  { %v1403_v29 = vpop.f32.mrf.mxu3 }
 0x571   :  { %v1437_v26 = vmul.f32 %v1403_v29, %v513_v53  ;;  %v1472_v52 = vpop.trf.xlu0  ;;  %v1959_v29 = vld [vmem:[%s3373_s4 + $0x18] sm:$0xff] }
 0x572   :  { %v1798_v43 = vpop.trf.xlu1  ;;  %2285 = vmatmul.msk.f32.gmra.mxu1 %vm1313_vm7, %v1472_v52 }
 0x573   :  { %v1449_v2 = vpack.c.bf16 %v1437_v26, %v3182_v34  ;;  %2335 = vmatmul.msk.f32.gmra.mxu0 %vm1313_vm7, %v1798_v43  ;;  %v1962_v26 = vld [vmem:[%s3373_s4 + $0x30] sm:$0xff] }
 0x574   :  { %2004 = vperm.xlu0 %2442, %v1962_v26  }
 0x578   :  { %v1406_v33 = vpop.f32.mrf.mxu3 }
 0x579   :  { %v1438_v21 = vmul.f32 %v1406_v33, %v516_v58  ;;  %v1473_v56 = vpop.trf.xlu0  ;;  %v1961_v33 = vld [vmem:[%s3373_s4 + $0x28] sm:$0xff] }
 0x57a   :  { %v1799_v4 = vpop.trf.xlu1  ;;  %2286 = vmatmul.msk.f32.gmra.mxu1 %vm1313_vm7, %v1473_v56  ;;  %v1602_v56 = vld [vmem:[#allocation4 + $0x18] sm:$0xff] }
 0x57b   :  { %2336 = vmatmul.msk.f32.gmra.mxu0 %vm1313_vm7, %v1799_v4  ;;  %v1965_v4 = vld [vmem:[%s3373_s4 + $0x48] sm:$0xff] }
 0x57c   :  { %2019 = vperm.xlu0 %2442, %v1965_v4  }
 0x580   :  { %v1409_v63 = vpop.f32.mrf.mxu3 }
 0x581   :  { %v1439_v20 = vmul.f32 %v1409_v63, %v518_v31  ;;  %v1474_v40 = vpop.trf.xlu0  ;;  %v2368_v31 = vld [vmem:[%s3375_s7 + $0x20] sm:$0xff]  ;;  %v2369_v63 = vld [vmem:[%s3375_s7 + $0x28] sm:$0xff] }
 0x582   :  { %v1800_v9 = vpop.trf.xlu1  ;;  %2287 = vmatmul.msk.f32.gmra.mxu1 %vm1313_vm7, %v1474_v40 }
 0x583   :  { %2337 = vmatmul.msk.f32.gmra.mxu0 %vm1313_vm7, %v1800_v9  ;;  %v1450_v19 = vpack.c.bf16 %v1439_v20, %v1438_v21  ;;  %v1968_v9 = vld [vmem:[%s3373_s4 + $0x60] sm:$0xff] }
 0x584   :  { %2034 = vperm.xlu0 %2442, %v1968_v9  }
 0x588   :  { %v1412_v5 = vpop.f32.mrf.mxu3  ;;  %2039 = vperm.xlu1 %2443, %v1969_v11  }
 0x589   :  { %v1440_v36 = vmul.f32 %v1412_v5, %v521_v60  ;;  %v1475_v51 = vpop.trf.xlu0  ;;  %v1971_v5 = vld [vmem:[%s3373_s4 + $0x78] sm:$0xff] }
 0x58a   :  { %v1801_v14 = vpop.trf.xlu1  ;;  %2288 = vmatmul.msk.f32.gmra.mxu1 %vm1313_vm7, %v1475_v51 }
 0x58b   :  { %2338 = vmatmul.msk.f32.gmra.mxu0 %vm1313_vm7, %v1801_v14  ;;  %v2370_v14 = vld [vmem:[%s3375_s7 + $0x30] sm:$0xff] }
 0x58c   :  { %2049 = vperm.xlu0 %2442, %v1971_v5  }
 0x590   :  { %v1415_v16 = vpop.f32.mrf.mxu3 }
 0x591   :  { %v1441_v8 = vmul.f32 %v1415_v16, %v523_v13  ;;  %v1476_v42 = vpop.trf.xlu0  ;;  %v1964_v13 = vld [vmem:[%s3373_s4 + $0x40] sm:$0xff] }
 0x592   :  { %v1802_v61 = vpop.trf.xlu1  ;;  %2289 = vmatmul.msk.f32.gmra.mxu1 %vm1313_vm7, %v1476_v42 }
 0x593   :  { %2339 = vmatmul.msk.f32.gmra.mxu0 %vm1313_vm7, %v1802_v61  ;;  %v1451_v50 = vpack.c.bf16 %v1441_v8, %v1440_v36 }
 0x598   :  { %v1418_v3 = vpop.f32.mrf.mxu3 }
 0x599   :  { %v1442_v28 = vmul.f32 %v1418_v3, %v526_v59  ;;  %v1967_v59 = vld [vmem:[%s3373_s4 + $0x58] sm:$0xff]  ;;  %v1970_v3 = vld [vmem:[%s3373_s4 + $0x70] sm:$0xff] }
 0x59a   :  { %v1803_v54 = vpop.trf.xlu1 }
 0x59b   :  { %2340 = vmatmul.msk.f32.gmra.mxu0 %vm1313_vm7, %v1803_v54 }
 0x5a0   :  { %v1421_v17 = vpop.f32.mrf.mxu3 }
 0x5a1   :  { %v1443_v15 = vmul.f32 %v1421_v17, %v528_v55  ;;  %v2371_v55 = vld [vmem:[%s3375_s7 + $0x38] sm:$0xff] }
 0x5a2   :  { %v1804_v27 = vpop.trf.xlu1 }
 0x5a3   :  { %2341 = vmatmul.msk.f32.gmra.mxu0 %vm1313_vm7, %v1804_v27  ;;  %v1452_v62 = vpack.c.bf16 %v1443_v15, %v1442_v28 }
 0x5a8   :  { %v1424_v25 = vpop.f32.mrf.mxu3 }
 0x5a9   :  { %v1444_v35 = vmul.f32 %v1424_v25, %v531_v47  ;;  %v1599_v25 = vld [vmem:[#allocation4] sm:$0xff] }
 0x5aa   :  { %v1805_v7 = vpop.trf.xlu1 }
 0x5ab   :  { %2342 = vmatmul.msk.f32.gmra.mxu0 %vm1313_vm7, %v1805_v7 }
 0x5b0   :  { %v1427_v32 = vpop.f32.mrf.mxu3 }
 0x5b1   :  { %v1445_v22 = vmul.f32 %v1427_v32, %v533_v30 }
 0x5b2   :  { %v1806_v38 = vpop.trf.xlu1 }
 0x5b3   :  { %v1453_v6 = vpack.c.bf16 %v1445_v22, %v1444_v35  ;;  %2343 = vmatmul.msk.f32.gmra.mxu0 %vm1313_vm7, %v1806_v38  ;;  %v1600_v22 = vld [vmem:[#allocation4 + $0x8] sm:$0xff] }
 0x5b5   :  { %1679 = vmatpush.bf16.msrb.mxu2 %v1453_v6 }
 0x5b9   :  { %1680 = vmatpush.bf16.msrb.mxu2 %v1452_v62  ;;  %v1601_v62 = vld [vmem:[#allocation4 + $0x10] sm:$0xff] }
 0x5ba   :  { %v1807_v48 = vpop.trf.xlu1 }
 0x5bb   :  { %2344 = vmatmul.msk.f32.gmra.mxu0 %vm1313_vm7, %v1807_v48 }
 0x5bd   :  { %1681 = vmatpush.bf16.msrb.mxu2 %v1451_v50 }
 0x5c1   :  { %1682 = vmatpush.bf16.msrb.mxu2 %v1450_v19 }
 0x5c2   :  { %v1808_v10 = vpop.trf.xlu1 }
 0x5c3   :  { %2345 = vmatmul.msk.f32.gmra.mxu0 %vm1313_vm7, %v1808_v10 }
 0x5c5   :  { %1683 = vmatpush.bf16.msrb.mxu2 %v1449_v2 }
 0x5c7   :  { %v1551_v61 = vpop.f32.mrf.mxu1 }
 0x5c8   :  { %v1615_v30 = vmul.f32 %v1599_v25, %v1551_v61 }
 0x5c9   :  { %1684 = vmatpush.bf16.msrb.mxu2 %v1448_v57  ;;  %v2366_v57 = vld [vmem:[%s3375_s7 + $0x10] sm:$0xff] }
 0x5ca   :  { %v1809_v53 = vpop.trf.xlu1 }
 0x5cb   :  { %2346 = vmatmul.msk.f32.vlgmr.msrb.gmra.mxu3 %vm1313_vm7, %v1809_v53 }
 0x5cd   :  { %1685 = vmatpush.bf16.msrb.mxu2 %v1447_v45  ;;  %v1477_v45 = vpop.trf.xlu0 }
 0x5ce   :  { %2290 = vmatmul.msk.f32.gmra.mxu1 %vm1313_vm7, %v1477_v45 }
 0x5d1   :  { %1686 = vmatpush.bf16.msrb.mxu2 %v1446_v44  ;;  %v1956_v44 = vld [vmem:[%s3373_s4] sm:$0xff] }
 0x5d2   :  { %v1810_v39 = vpop.trf.xlu1  ;;  %1974 = vperm.xlu2 %2441, %v1956_v44  }
 0x5d3   :  { %2347 = vmatmul.msk.f32.gmra.mxu3 %vm1313_vm7, %v1810_v39 }
 0x5d4   :  { %1687 = vmatmul.bf16.vlgmr.msrb.gmra.mxu2 %v2364_v18 }
 0x5d5   :  { %v1478_v34 = vpop.trf.xlu0 }
 0x5d6   :  { %2291 = vmatmul.msk.f32.gmra.mxu1 %vm1313_vm7, %v1478_v34 }
 0x5d8   :  { %v1876_v17 = vpop.f32.mrf.mxu0 }
 0x5da   :  { %1989 = vperm.xlu2 %2441, %v1959_v29  }
 0x5dd   :  { %v1479_v58 = vpop.trf.xlu0 }
 0x5de   :  { %2292 = vmatmul.msk.f32.gmra.mxu1 %vm1313_vm7, %v1479_v58 }
 0x5e0   :  { %v1879_v47 = vpop.f32.mrf.mxu0 }
 0x5e2   :  { %1999 = vperm.xlu2 %2441, %v1961_v33  }
 0x5e4   :  { %1692 = vmatmul.bf16.gmra.mxu2 %v2365_v12 }
 0x5e5   :  { %v1480_v43 = vpop.trf.xlu0 }
 0x5e6   :  { %2293 = vmatmul.msk.f32.gmra.mxu1 %vm1313_vm7, %v1480_v43 }
 0x5e7   :  { %v1554_v54 = vpop.f32.mrf.mxu1 }
 0x5e8   :  { %v1882_v38 = vpop.f32.mrf.mxu0  ;;  %v1616_v6 = vmul.f32 %v1600_v22, %v1554_v54 }
 0x5ea   :  { %2014 = vperm.xlu2 %2441, %v1964_v13   ;;  %v1605_v13 = vld [vmem:[#allocation4 + $0x30] sm:$0xff] }
 0x5ed   :  { %v1481_v2 = vpop.trf.xlu0 }
 0x5ee   :  { %2294 = vmatmul.msk.f32.gmra.mxu1 %vm1313_vm7, %v1481_v2 }
 0x5ef   :  { %v1557_v27 = vpop.f32.mrf.mxu1 }
 0x5f0   :  { %v1617_v20 = vmul.f32 %v1601_v62, %v1557_v27  ;;  %v1885_v50 = vpop.f32.mrf.mxu0 }
 0x5f2   :  { %2029 = vperm.xlu2 %2441, %v1967_v59  }
 0x5f4   :  { %1697 = vmatmul.bf16.gmra.mxu2 %v2366_v57  ;;  %v1603_v57 = vld [vmem:[#allocation4 + $0x20] sm:$0xff] }
 0x5f5   :  { %v1482_v21 = vpop.trf.xlu0 }
 0x5f6   :  { %2295 = vmatmul.msk.f32.gmra.mxu1 %vm1313_vm7, %v1482_v21 }
 0x5f7   :  { %v1560_v7 = vpop.f32.mrf.mxu1 }
 0x5f8   :  { %v1618_v40 = vmul.f32 %v1602_v56, %v1560_v7  ;;  %v1888_v51 = vpop.f32.mrf.mxu0 }
 0x5fa   :  { %2044 = vperm.xlu2 %2441, %v1970_v3  }
 0x5fd   :  { %v1483_v60 = vpop.trf.xlu0 }
 0x5fe   :  { %2296 = vmatmul.msk.f32.gmra.mxu1 %vm1313_vm7, %v1483_v60 }
 0x5ff   :  { %v1563_v15 = vpop.f32.mrf.mxu1 }
 0x600   :  { %v1891_v43 = vpop.f32.mrf.mxu0 }
 0x604   :  { %1702 = vmatmul.bf16.gmra.mxu2 %v2367_v0  ;;  %v1619_v0 = vmul.f32 %v1603_v57, %v1563_v15  ;;  %v1610_v57 = vld [vmem:[#allocation4 + $0x58] sm:$0xff] }
 0x605   :  { %v1484_v11 = vpop.trf.xlu0 }
 0x606   :  { %2297 = vmatmul.msk.f32.gmra.mxu1 %vm1313_vm7, %v1484_v11 }
 0x607   :  { %v1566_v19 = vpop.f32.mrf.mxu1 }
 0x60d   :  { %v1485_v16 = vpop.trf.xlu0 }
 0x60e   :  { %2298 = vmatmul.msk.f32.gmra.mxu1 %vm1313_vm7, %v1485_v16 }
 0x60f   :  { %v1569_v42 = vpop.f32.mrf.mxu1 }
 0x610   :  { %v1621_v61 = vmul.f32 %v1605_v13, %v1569_v42 }
 0x614   :  { %1707 = vmatmul.bf16.gmra.mxu2 %v2368_v31  ;;  %v1604_v31 = vld [vmem:[#allocation4 + $0x28] sm:$0xff] }
 0x615   :  { %v1980_v18 = vpop.permute.xlu0 %1979  ;;  %v1620_v60 = vmul.f32 %v1604_v31, %v1566_v19 }
 0x61d   :  { %v2005_v15 = vpop.permute.xlu0 %2004 }
 0x624   :  { %1712 = vmatmul.bf16.gmra.mxu2 %v2369_v63 }
 0x62c   :  { %v1975_v36 = vpop.permute.xlu2 %1974 }
 0x634   :  { %1717 = vmatmul.bf16.gmra.mxu2 %v2370_v14  ;;  %v1990_v21 = vpop.permute.xlu2 %1989  ;;  %v1894_v14 = vpop.f32.mrf.mxu0 }
 0x63c   :  { %v2000_v27 = vpop.permute.xlu2 %1999  ;;  %v1897_v7 = vpop.f32.mrf.mxu0 }
 0x644   :  { %1722 = vmatmul.bf16.gmra.mxu2 %v2371_v55 }
 0x64b   :  { %v1572_v33 = vpop.f32.mrf.mxu1 }
 0x653   :  { %v1575_v16 = vpop.f32.mrf.mxu1 }
 0x657   :  { %v1688_v32 = vpop.f32.mrf.mxu2 }
 0x658   :  { %v1728_v35 = vadd.f32 %v1688_v32, %v1615_v30 }
 0x65a   :  { %1744 = vst.msk [vmem:[#allocation4] sm:$0xff] %vm35_vm0, %v1728_v35 }
 0x65b   :  { %v1578_v32 = vpop.f32.mrf.mxu1 }
 0x65f   :  { %v1690_v23 = vpop.f32.mrf.mxu2 }
 0x660   :  { %v1729_v28 = vadd.f32 %v1690_v23, %v1616_v6 }
 0x661   :  { %v1924_v8 = vld [vmem:[#allocation4] sm:$0xff] }
 0x662   :  { %1745 = vst.msk [vmem:[#allocation4 + $0x8] sm:$0xff] %vm35_vm0, %v1729_v28  ;;  %v1940_v48 = vmul.f32 %v1924_v8, %v1876_v17  ;;  %v1606_v17 = vld [vmem:[#allocation4 + $0x38] sm:$0xff]  ;;  %v1900_v8 = vpop.f32.mrf.mxu0 }
 0x663   :  { %v1622_v25 = vmul.f32 %v1606_v17, %v1572_v33 }
 0x664   :  { %v2052_v46 = vmul.f32 %v1975_v36, %v1940_v48  ;;  %v1581_v36 = vpop.f32.mrf.mxu1 }
 0x666   :  { %2068 = vst.msk [vmem:[%s3376_s8] sm:$0xff] %vm35_vm0, %v2052_v46 }
 0x667   :  { %v1693_v10 = vpop.f32.mrf.mxu2 }
 0x668   :  { %v1730_v52 = vadd.f32 %v1693_v10, %v1617_v20 }
 0x669   :  { %v1925_v53 = vld [vmem:[#allocation4 + $0x8] sm:$0xff] }
 0x66a   :  { %1746 = vst.msk [vmem:[#allocation4 + $0x10] sm:$0xff] %vm35_vm0, %v1730_v52  ;;  %v1941_v39 = vmul.f32 %v1925_v53, %v1879_v47  ;;  %v1903_v56 = vpop.f32.mrf.mxu0 }
 0x66c   :  { %v2053_v1 = vmul.f32 %v1980_v18, %v1941_v39  ;;  %v1609_v39 = vld [vmem:[#allocation4 + $0x50] sm:$0xff] }
 0x66e   :  { %2069 = vst.msk [vmem:[%s3376_s8 + $0x8] sm:$0xff] %vm35_vm0, %v2053_v1  ;;  %v2015_v1 = vpop.permute.xlu2 %2014 }
 0x66f   :  { %v1695_v12 = vpop.f32.mrf.mxu2 }
 0x670   :  { %v1731_v44 = vadd.f32 %v1695_v12, %v1618_v40  ;;  %v1584_v40 = vpop.f32.mrf.mxu1  ;;  %v1625_v12 = vmul.f32 %v1609_v39, %v1581_v36  ;;  %v1918_v36 = vpop.f32.mrf.mxu3 }
 0x671   :  { %v1926_v45 = vld [vmem:[#allocation4 + $0x10] sm:$0xff] }
 0x672   :  { %1747 = vst.msk [vmem:[#allocation4 + $0x18] sm:$0xff] %vm35_vm0, %v1731_v44  ;;  %v1942_v34 = vmul.f32 %v1926_v45, %v1882_v38  ;;  %v1607_v38 = vld [vmem:[#allocation4 + $0x40] sm:$0xff] }
 0x673   :  { %v1623_v23 = vmul.f32 %v1607_v38, %v1575_v16 }
 0x674   :  { %v2054_v58 = vmul.f32 %v3154_v24, %v1942_v34  ;;  %v2020_v34 = vpop.permute.xlu0 %2019 }
 0x676   :  { %2070 = vst.msk [vmem:[%s3376_s8 + $0x10] sm:$0xff] %vm35_vm0, %v2054_v58 }
 0x677   :  { %v1698_v29 = vpop.f32.mrf.mxu2 }
 0x678   :  { %v1732_v26 = vadd.f32 %v1698_v29, %v1619_v0  ;;  %v1906_v0 = vpop.f32.mrf.mxu0  ;;  %v1587_v29 = vpop.f32.mrf.mxu1 }
 0x679   :  { %v1927_v2 = vld [vmem:[#allocation4 + $0x18] sm:$0xff] }
 0x67a   :  { %1748 = vst.msk [vmem:[#allocation4 + $0x20] sm:$0xff] %vm35_vm0, %v1732_v26  ;;  %v1943_v4 = vmul.f32 %v1927_v2, %v1885_v50  ;;  %v1608_v50 = vld [vmem:[#allocation4 + $0x48] sm:$0xff]  ;;  %v1626_v26 = vmul.f32 %v1610_v57, %v1584_v40 }
 0x67b   :  { %v1624_v10 = vmul.f32 %v1608_v50, %v1578_v32 }
 0x67c   :  { %v2055_v63 = vmul.f32 %v1990_v21, %v1943_v4  ;;  %v1611_v21 = vld [vmem:[#allocation4 + $0x60] sm:$0xff] }
 0x67e   :  { %2071 = vst.msk [vmem:[%s3376_s8 + $0x18] sm:$0xff] %vm35_vm0, %v2055_v63  ;;  %v1627_v63 = vmul.f32 %v1611_v21, %v1587_v29 }
 0x67f   :  { %v1700_v24 = vpop.f32.mrf.mxu2 }
 0x680   :  { %v1733_v9 = vadd.f32 %v1700_v24, %v1620_v60  ;;  %v1909_v24 = vpop.f32.mrf.mxu0 }
 0x681   :  { %v1928_v11 = vld [vmem:[#allocation4 + $0x20] sm:$0xff] }
 0x682   :  { %1749 = vst.msk [vmem:[#allocation4 + $0x28] sm:$0xff] %vm35_vm0, %v1733_v9  ;;  %v1944_v5 = vmul.f32 %v1928_v11, %v1888_v51  ;;  %v1590_v9 = vpop.f32.mrf.mxu1 }
 0x684   :  { %v2056_v59 = vmul.f32 %v3158_v41, %v1944_v5 }
 0x686   :  { %2072 = vst.msk [vmem:[%s3376_s8 + $0x20] sm:$0xff] %vm35_vm0, %v2056_v59  ;;  %v2030_v59 = vpop.permute.xlu2 %2029 }
 0x687   :  { %v1703_v3 = vpop.f32.mrf.mxu2 }
 0x688   :  { %v1734_v54 = vadd.f32 %v1703_v3, %v1621_v61 }
 0x689   :  { %v1929_v55 = vld [vmem:[#allocation4 + $0x28] sm:$0xff] }
 0x68a   :  { %1750 = vst.msk [vmem:[#allocation4 + $0x30] sm:$0xff] %vm35_vm0, %v1734_v54  ;;  %v1945_v47 = vmul.f32 %v1929_v55, %v1891_v43  ;;  %v1912_v54 = vpop.f32.mrf.mxu0  ;;  %v1593_v55 = vpop.f32.mrf.mxu1 }
 0x68c   :  { %v2057_v30 = vmul.f32 %v2000_v27, %v1945_v47  ;;  %v1613_v47 = vld [vmem:[#allocation4 + $0x70] sm:$0xff] }
 0x68e   :  { %2073 = vst.msk [vmem:[%s3376_s8 + $0x28] sm:$0xff] %vm35_vm0, %v2057_v30  ;;  %v1629_v30 = vmul.f32 %v1613_v47, %v1593_v55 }
 0x68f   :  { %v1705_v41 = vpop.f32.mrf.mxu2 }
 0x690   :  { %v1735_v35 = vadd.f32 %v1705_v41, %v1622_v25 }
 0x691   :  { %v1930_v22 = vld [vmem:[#allocation4 + $0x30] sm:$0xff] }
 0x692   :  { %1751 = vst.msk [vmem:[#allocation4 + $0x38] sm:$0xff] %vm35_vm0, %v1735_v35  ;;  %v1946_v6 = vmul.f32 %v1930_v22, %v1894_v14  ;;  %v1612_v14 = vld [vmem:[#allocation4 + $0x68] sm:$0xff]  ;;  %v1915_v22 = vpop.f32.mrf.mxu0 }
 0x693   :  { %v1628_v61 = vmul.f32 %v1612_v14, %v1590_v9 }
 0x694   :  { %v2058_v28 = vmul.f32 %v2005_v15, %v1946_v6  ;;  %v1596_v15 = vpop.f32.mrf.mxu1  ;;  %v1614_v6 = vld [vmem:[#allocation4 + $0x78] sm:$0xff] }
 0x696   :  { %2074 = vst.msk [vmem:[%s3376_s8 + $0x30] sm:$0xff] %vm35_vm0, %v2058_v28  ;;  %v2040_v28 = vpop.permute.xlu1 %2039 }
 0x697   :  { %v1708_v62 = vpop.f32.mrf.mxu2 }
 0x698   :  { %v1736_v48 = vadd.f32 %v1708_v62, %v1623_v23  ;;  %v1630_v62 = vmul.f32 %v1614_v6, %v1596_v15 }
 0x699   :  { %v1931_v20 = vld [vmem:[#allocation4 + $0x38] sm:$0xff] }
 0x69a   :  { %1752 = vst.msk [vmem:[#allocation4 + $0x40] sm:$0xff] %vm35_vm0, %v1736_v48  ;;  %v1947_v46 = vmul.f32 %v1931_v20, %v1897_v7  ;;  %v2035_v7 = vpop.permute.xlu0 %2034 }
 0x69c   :  { %v2059_v19 = vmul.f32 %v3164_v49, %v1947_v46 }
 0x69e   :  { %2075 = vst.msk [vmem:[%s3376_s8 + $0x38] sm:$0xff] %vm35_vm0, %v2059_v19  ;;  %v2045_v19 = vpop.permute.xlu2 %2044 }
 0x69f   :  { %v1710_v52 = vpop.f32.mrf.mxu2 }
 0x6a0   :  { %v1737_v53 = vadd.f32 %v1710_v52, %v1624_v10  ;;  %v1921_v52 = vpop.f32.mrf.mxu3 }
 0x6a1   :  { %v1932_v18 = vld [vmem:[#allocation4 + $0x40] sm:$0xff] }
 0x6a2   :  { %1753 = vst.msk [vmem:[#allocation4 + $0x48] sm:$0xff] %vm35_vm0, %v1737_v53  ;;  %v1948_v51 = vmul.f32 %v1932_v18, %v1900_v8  ;;  %v2050_v18 = vpop.permute.xlu0 %2049 }
 0x6a4   :  { %v2060_v42 = vmul.f32 %v2015_v1, %v1948_v51 }
 0x6a6   :  { %2076 = vst.msk [vmem:[%s3376_s8 + $0x40] sm:$0xff] %vm35_vm0, %v2060_v42 }
 0x6a7   :  { %v1713_v49 = vpop.f32.mrf.mxu2 }
 0x6a8   :  { %v1738_v44 = vadd.f32 %v1713_v49, %v1625_v12 }
 0x6a9   :  { %v1933_v45 = vld [vmem:[#allocation4 + $0x48] sm:$0xff] }
 0x6aa   :  { %1754 = vst.msk [vmem:[#allocation4 + $0x50] sm:$0xff] %vm35_vm0, %v1738_v44  ;;  %v1949_v58 = vmul.f32 %v1933_v45, %v1903_v56 }
 0x6ac   :  { %v2061_v43 = vmul.f32 %v2020_v34, %v1949_v58 }
 0x6ae   :  { %2077 = vst.msk [vmem:[%s3376_s8 + $0x48] sm:$0xff] %vm35_vm0, %v2061_v43 }
 0x6af   :  { %v1715_v2 = vpop.f32.mrf.mxu2 }
 0x6b0   :  { %v1739_v31 = vadd.f32 %v1715_v2, %v1626_v26 }
 0x6b1   :  { %v1934_v33 = vld [vmem:[#allocation4 + $0x50] sm:$0xff] }
 0x6b2   :  { %1755 = vst.msk [vmem:[#allocation4 + $0x58] sm:$0xff] %vm35_vm0, %v1739_v31  ;;  %v1950_v4 = vmul.f32 %v1934_v33, %v1906_v0 }
 0x6b4   :  { %v2062_v60 = vmul.f32 %v3170_v37, %v1950_v4 }
 0x6b6   :  { %2078 = vst.msk [vmem:[%s3376_s8 + $0x50] sm:$0xff] %vm35_vm0, %v2062_v60 }
 0x6b7   :  { %v1718_v11 = vpop.f32.mrf.mxu2 }
 0x6b8   :  { %v1740_v13 = vadd.f32 %v1718_v11, %v1627_v63 }
 0x6b9   :  { %v1935_v5 = vld [vmem:[#allocation4 + $0x58] sm:$0xff] }
 0x6ba   :  { %1756 = vst.msk [vmem:[#allocation4 + $0x60] sm:$0xff] %vm35_vm0, %v1740_v13  ;;  %v1951_v16 = vmul.f32 %v1935_v5, %v1909_v24 }
 0x6bc   :  { %v2063_v3 = vmul.f32 %v2030_v59, %v1951_v16 }
 0x6be   :  { %2079 = vst.msk [vmem:[%s3376_s8 + $0x58] sm:$0xff] %vm35_vm0, %v2063_v3 }
 0x6bf   :  { %v1720_v37 = vpop.f32.mrf.mxu2 }
 0x6c0   :  { %v1741_v17 = vadd.f32 %v1720_v37, %v1628_v61 }
 0x6c1   :  { %v1936_v27 = vld [vmem:[#allocation4 + $0x60] sm:$0xff] }
 0x6c2   :  { %1757 = vst.msk [vmem:[#allocation4 + $0x68] sm:$0xff] %vm35_vm0, %v1741_v17  ;;  %v1952_v25 = vmul.f32 %v1936_v27, %v1912_v54 }
 0x6c4   :  { %v2064_v32 = vmul.f32 %v2035_v7, %v1952_v25 }
 0x6c6   :  { %2080 = vst.msk [vmem:[%s3376_s8 + $0x60] sm:$0xff] %vm35_vm0, %v2064_v32 }
 0x6c7   :  { %v1723_v41 = vpop.f32.mrf.mxu2 }
 0x6c8   :  { %v1742_v35 = vadd.f32 %v1723_v41, %v1629_v30 }
 0x6c9   :  { %v1937_v38 = vld [vmem:[#allocation4 + $0x68] sm:$0xff] }
 0x6ca   :  { %v1953_v23 = vmul.f32 %v1937_v38, %v1915_v22  ;;  %1758 = vst.msk [vmem:[#allocation4 + $0x70] sm:$0xff] %vm35_vm0, %v1742_v35 }
 0x6cc   :  { %v2065_v8 = vmul.f32 %v2040_v28, %v1953_v23 }
 0x6ce   :  { %2081 = vst.msk [vmem:[%s3376_s8 + $0x68] sm:$0xff] %vm35_vm0, %v2065_v8 }
 0x6cf   :  { %v1725_v48 = vpop.f32.mrf.mxu2 }
 0x6d0   :  { %v1743_v20 = vadd.f32 %v1725_v48, %v1630_v62 }
 0x6d1   :  { %v1938_v50 = vld [vmem:[#allocation4 + $0x70] sm:$0xff] }
 0x6d2   :  { %1759 = vst.msk [vmem:[#allocation4 + $0x78] sm:$0xff] %vm35_vm0, %v1743_v20  ;;  %v1954_v46 = vmul.f32 %v1938_v50, %v1918_v36 }
 0x6d4   :  { %v2066_v10 = vmul.f32 %v2045_v19, %v1954_v46 }
 0x6d6   :  { %2082 = vst.msk [vmem:[%s3376_s8 + $0x70] sm:$0xff] %vm35_vm0, %v2066_v10 }
 0x6d9   :  { %v1939_v53 = vld [vmem:[#allocation4 + $0x78] sm:$0xff] }
 0x6da   :  { %v1955_v56 = vmul.f32 %v1939_v53, %v1921_v52 }
 0x6dc   :  { %v2067_v39 = vmul.f32 %v2050_v18, %v1955_v56 }
 0x6de   :  { %2083 = vst.msk [vmem:[%s3376_s8 + $0x78] sm:$0xff] %vm35_vm0, %v2067_v39 }

</bundles_post_ra>
